<compile_context>
chip_gen: v7x
topology: tpu7x:2x2x1
jax: 0.10.0
libtpu: 0.0.40
codegen_flags: <defaults>
</compile_context>

<pallas_src>
import jax
import jax.numpy as jnp
from jax.experimental import pallas as pl
from jax.experimental.pallas import tpu as pltpu

HIDDEN = 256      # matches 256-wide MXU tiles on v6e/v7x, 2x128 on v5e
OUT_PAD = 128     # lane-dense padded width of the output head


def _round_up(a, m):
    return ((a + m - 1) // m) * m


def _num_tensorcores():
    """TensorCores per chip: 2 on v7x / v5p / v4 (megacore), 1 on v5e / v6e."""
    try:
        kind = jax.devices()[0].device_kind.lower()
    except Exception:
        return 1
    if any(tag in kind for tag in ("v7", "v5p", "v4")):
        return 2
    return 1


def _resident_spec(shape):
    """Full-array block pinned to (0, 0): DMA'd once, resident across grid steps.

    Buffered(1): constant-index blocks never re-fetch, so a single buffer halves
    their VMEM footprint. Fall back gracefully if pipeline_mode is unsupported.
    """
    try:
        return pl.BlockSpec(shape, lambda i: (0, 0), pipeline_mode=pl.Buffered(1))
    except (TypeError, AttributeError):
        return pl.BlockSpec(shape, lambda i: (0, 0))


def dqn_kernel(x_ref,
               w1_ref, b1_ref,
               w2_ref, b2_ref,
               w3_ref, b3_ref,
               wo_ref, bo_ref,
               o_ref):
    # All four layers on the MXU: bf16 inputs, f32 accumulation, f32 bias + ReLU.
    x = x_ref[...].astype(jnp.bfloat16)                      # (TB, n_obs)

    # fc1: K = n_obs (4) zero-padded MXU pass -- MXU is idle here anyway and this
    # avoids keeping a (TB, 256) f32 VPU accumulator live at large TB.
    h = jnp.dot(x, w1_ref[...], preferred_element_type=jnp.float32)
    h = jnp.maximum(h + b1_ref[...], 0.0)

    h = jnp.dot(h.astype(jnp.bfloat16), w2_ref[...],
                preferred_element_type=jnp.float32)
    h = jnp.maximum(h + b2_ref[...], 0.0)

    h = jnp.dot(h.astype(jnp.bfloat16), w3_ref[...],
                preferred_element_type=jnp.float32)
    h = jnp.maximum(h + b3_ref[...], 0.0)

    q = jnp.dot(h.astype(jnp.bfloat16), wo_ref[...],
                preferred_element_type=jnp.float32)
    o_ref[...] = (q + bo_ref[...]).astype(o_ref.dtype)       # lane-dense (TB, 128)


def dqn_forward(x, params, n_act, *, max_block_b=1024):
    """x: [B, n_obs] f32. Returns Q-values [B, n_act] f32."""
    B, n_obs = x.shape
    w1, b1 = params["w1"], params["b1"]
    w2, b2 = params["w2"], params["b2"]
    w3, b3 = params["w3"], params["b3"]
    wo, bo = params["wo"], params["bo"]

    # Generation-aware batch tiling:
    #   single TC  -> one grid step covering the whole (padded) batch,
    #   2 TCs      -> exactly num_cores parallel steps (one per core).
    n_tc = _num_tensorcores()
    B8 = _round_up(B, 8)
    if n_tc <= 1:
        TB = min(B8, max_block_b)
    else:
        TB = min(_round_up(-(-B8 // n_tc), 8), max_block_b)
    B_pad = _round_up(B, TB)
    if B_pad != B:
        x = jnp.pad(x, ((0, B_pad - B), (0, 0)))
    grid = (B_pad // TB,)

    cost = pl.CostEstimate(
        flops=2 * B_pad * (n_obs * HIDDEN + 2 * HIDDEN * HIDDEN + HIDDEN * OUT_PAD),
        transcendentals=0,
        bytes_accessed=(x.size * 4 + B_pad * OUT_PAD * 4
                        + (w1.size + w2.size + w3.size + wo.size) * 2
                        + (b1.size + b2.size + b3.size + bo.size) * 4),
    )

    out = pl.pallas_call(
        dqn_kernel,
        out_shape=jax.ShapeDtypeStruct((B_pad, OUT_PAD), jnp.float32),
        grid=grid,
        in_specs=[
            pl.BlockSpec((TB, n_obs), lambda i: (i, 0)),   # x: tiled over batch
            _resident_spec(w1.shape), _resident_spec(b1.shape),
            _resident_spec(w2.shape), _resident_spec(b2.shape),
            _resident_spec(w3.shape), _resident_spec(b3.shape),
            _resident_spec(wo.shape), _resident_spec(bo.shape),
        ],
        out_specs=pl.BlockSpec((TB, OUT_PAD), lambda i: (i, 0)),
        compiler_params=pltpu.CompilerParams(
            dimension_semantics=("parallel",)),            # shards grid over 2 TCs
        cost_estimate=cost,
    )(x, w1, b1, w2, b2, w3, b3, wo, bo)

    # Slice away batch padding and the zero-padded action columns (semantics of
    # the original module). A fused consumer could take the padded slab directly.
    return out[:B, :n_act]


def init_params(key, n_obs, n_act):
    """nn.Linear-style init (uniform +/-1/sqrt(fan_in)); weights stored [in, out]."""
    def linear(key, fan_in, fan_out):
        kw, kb = jax.random.split(key)
        bound = 1.0 / jnp.sqrt(jnp.float32(fan_in))
        w = jax.random.uniform(kw, (fan_in, fan_out), jnp.float32, -bound, bound)
        b = jax.random.uniform(kb, (1, fan_out), jnp.float32, -bound, bound)
        return w, b

    k1, k2, k3, k4 = jax.random.split(key, 4)
    w1, b1 = linear(k1, n_obs, HIDDEN)
    w2, b2 = linear(k2, HIDDEN, HIDDEN)
    w3, b3 = linear(k3, HIDDEN, HIDDEN)
    wo, bo = linear(k4, HIDDEN, n_act)

    # Zero-pad the output head to a lane-dense width of 128 columns.
    wo_pad = jnp.zeros((HIDDEN, OUT_PAD), jnp.float32).at[:, :n_act].set(wo)
    bo_pad = jnp.zeros((1, OUT_PAD), jnp.float32).at[:, :n_act].set(bo)

    return {
        "w1": w1.astype(jnp.bfloat16), "b1": b1,
        "w2": w2.astype(jnp.bfloat16), "b2": b2,
        "w3": w3.astype(jnp.bfloat16), "b3": b3,
        "wo": wo_pad.astype(jnp.bfloat16), "bo": bo_pad,
    }


def ref_forward(x, p, n_act):
    """Pure-JAX reference mimicking the kernel's exact dtype pipeline."""
    f32 = jnp.float32
    hi = jax.lax.Precision.HIGHEST
    h = x.astype(jnp.bfloat16).astype(f32)
    h = jnp.maximum(jnp.dot(h, p["w1"].astype(f32), precision=hi) + p["b1"], 0.0)
    h = h.astype(jnp.bfloat16).astype(f32)
    h = jnp.maximum(jnp.dot(h, p["w2"].astype(f32), precision=hi) + p["b2"], 0.0)
    h = h.astype(jnp.bfloat16).astype(f32)
    h = jnp.maximum(jnp.dot(h, p["w3"].astype(f32), precision=hi) + p["b3"], 0.0)
    h = h.astype(jnp.bfloat16).astype(f32)
    q = jnp.dot(h, p["wo"].astype(f32), precision=hi) + p["bo"]
    return q[:, :n_act]


if __name__ == "__main__":
    key = jax.random.PRNGKey(0)
    kx, kp = jax.random.split(key)

    # CartPole-like shapes: 4 observations, 2 actions; replay-sized batch of 256
    # so the generation-aware tiling (grid=1 on 1-TC chips, grid=2 on 2-TC chips)
    # is actually exercised.
    B, n_obs, n_act = 256, 4, 2
    x = jax.random.normal(kx, (B, n_obs), jnp.float32)
    params = init_params(kp, n_obs, n_act)

    out = dqn_forward(x, params, n_act)
    out = jax.block_until_ready(out)

    expected = ref_forward(x, params, n_act)
    assert out.shape == (B, n_act)
    assert jnp.allclose(out, expected, atol=1e-2, rtol=1e-2), (
        float(jnp.max(jnp.abs(out - expected))))

    print("KERNEL_OK")
</pallas_src>

<mosaic_0001>
module attributes {stable_mosaic.version = 11 : i64} {
  func.func @dqn_kernel(%arg0: i32, %arg1: memref<256x4xf32, #tpu.memory_space<vmem>>, %arg2: memref<4x256xbf16, #tpu.memory_space<vmem>>, %arg3: memref<1x256xf32, #tpu.memory_space<vmem>>, %arg4: memref<256x256xbf16, #tpu.memory_space<vmem>>, %arg5: memref<1x256xf32, #tpu.memory_space<vmem>>, %arg6: memref<256x256xbf16, #tpu.memory_space<vmem>>, %arg7: memref<1x256xf32, #tpu.memory_space<vmem>>, %arg8: memref<256x128xbf16, #tpu.memory_space<vmem>>, %arg9: memref<1x128xf32, #tpu.memory_space<vmem>>, %arg10: memref<256x128xf32, #tpu.memory_space<vmem>>) attributes {dimension_semantics = [#tpu.dimension_semantics<parallel>], iteration_bounds = array<i64: 1>, scalar_prefetch = 0 : i64, scratch_operands = 0 : i64, tpu.core_type = #tpu.core_type<tc>, window_params = [{transform_indices = @transform_0, window_bounds = array<i64: 256, 4>}, {pipeline_mode = #tpu.pipeline_mode<synchronous>, transform_indices = @transform_1, window_bounds = array<i64: 4, 256>}, {pipeline_mode = #tpu.pipeline_mode<synchronous>, transform_indices = @transform_2, window_bounds = array<i64: 1, 256>}, {pipeline_mode = #tpu.pipeline_mode<synchronous>, transform_indices = @transform_3, window_bounds = array<i64: 256, 256>}, {pipeline_mode = #tpu.pipeline_mode<synchronous>, transform_indices = @transform_4, window_bounds = array<i64: 1, 256>}, {pipeline_mode = #tpu.pipeline_mode<synchronous>, transform_indices = @transform_5, window_bounds = array<i64: 256, 256>}, {pipeline_mode = #tpu.pipeline_mode<synchronous>, transform_indices = @transform_6, window_bounds = array<i64: 1, 256>}, {pipeline_mode = #tpu.pipeline_mode<synchronous>, transform_indices = @transform_7, window_bounds = array<i64: 256, 128>}, {pipeline_mode = #tpu.pipeline_mode<synchronous>, transform_indices = @transform_8, window_bounds = array<i64: 1, 128>}, {transform_indices = @transform_9, window_bounds = array<i64: 256, 128>}]} {
    %c0 = arith.constant 0 : index
    %c0_0 = arith.constant 0 : index
    %0 = vector.load %arg1[%c0, %c0_0] : memref<256x4xf32, #tpu.memory_space<vmem>>, vector<256x4xf32>
    %1 = arith.truncf %0 : vector<256x4xf32> to vector<256x4xbf16>
    %c0_1 = arith.constant 0 : index
    %c0_2 = arith.constant 0 : index
    %2 = vector.load %arg2[%c0_1, %c0_2] : memref<4x256xbf16, #tpu.memory_space<vmem>>, vector<4x256xbf16>
    %cst = arith.constant dense<0.000000e+00> : vector<256x256xf32>
    %3 = tpu.matmul %1, %2, %cst {dimension_numbers = #tpu.dot_dimension_numbers<[1], [0], [0], [1], [0, 0, 1, 1], [], []>} : vector<256x4xbf16>, vector<4x256xbf16>, vector<256x256xf32> -> vector<256x256xf32>
    %c0_3 = arith.constant 0 : index
    %c0_4 = arith.constant 0 : index
    %4 = vector.load %arg3[%c0_3, %c0_4] : memref<1x256xf32, #tpu.memory_space<vmem>>, vector<1x256xf32>
    %5 = vector.broadcast %4 : vector<1x256xf32> to vector<256x256xf32>
    %6 = arith.addf %3, %5 : vector<256x256xf32>
    %cst_5 = arith.constant 0.000000e+00 : f32
    %7 = vector.broadcast %cst_5 : f32 to vector<256x256xf32>
    %8 = arith.maximumf %6, %7 : vector<256x256xf32>
    %9 = arith.truncf %8 : vector<256x256xf32> to vector<256x256xbf16>
    %c0_6 = arith.constant 0 : index
    %c0_7 = arith.constant 0 : index
    %10 = vector.load %arg4[%c0_6, %c0_7] : memref<256x256xbf16, #tpu.memory_space<vmem>>, vector<256x256xbf16>
    %cst_8 = arith.constant dense<0.000000e+00> : vector<256x256xf32>
    %11 = tpu.matmul %9, %10, %cst_8 {dimension_numbers = #tpu.dot_dimension_numbers<[1], [0], [0], [1], [0, 0, 1, 1], [], []>} : vector<256x256xbf16>, vector<256x256xbf16>, vector<256x256xf32> -> vector<256x256xf32>
    %c0_9 = arith.constant 0 : index
    %c0_10 = arith.constant 0 : index
    %12 = vector.load %arg5[%c0_9, %c0_10] : memref<1x256xf32, #tpu.memory_space<vmem>>, vector<1x256xf32>
    %13 = vector.broadcast %12 : vector<1x256xf32> to vector<256x256xf32>
    %14 = arith.addf %11, %13 : vector<256x256xf32>
    %cst_11 = arith.constant 0.000000e+00 : f32
    %15 = vector.broadcast %cst_11 : f32 to vector<256x256xf32>
    %16 = arith.maximumf %14, %15 : vector<256x256xf32>
    %17 = arith.truncf %16 : vector<256x256xf32> to vector<256x256xbf16>
    %c0_12 = arith.constant 0 : index
    %c0_13 = arith.constant 0 : index
    %18 = vector.load %arg6[%c0_12, %c0_13] : memref<256x256xbf16, #tpu.memory_space<vmem>>, vector<256x256xbf16>
    %cst_14 = arith.constant dense<0.000000e+00> : vector<256x256xf32>
    %19 = tpu.matmul %17, %18, %cst_14 {dimension_numbers = #tpu.dot_dimension_numbers<[1], [0], [0], [1], [0, 0, 1, 1], [], []>} : vector<256x256xbf16>, vector<256x256xbf16>, vector<256x256xf32> -> vector<256x256xf32>
    %c0_15 = arith.constant 0 : index
    %c0_16 = arith.constant 0 : index
    %20 = vector.load %arg7[%c0_15, %c0_16] : memref<1x256xf32, #tpu.memory_space<vmem>>, vector<1x256xf32>
    %21 = vector.broadcast %20 : vector<1x256xf32> to vector<256x256xf32>
    %22 = arith.addf %19, %21 : vector<256x256xf32>
    %cst_17 = arith.constant 0.000000e+00 : f32
    %23 = vector.broadcast %cst_17 : f32 to vector<256x256xf32>
    %24 = arith.maximumf %22, %23 : vector<256x256xf32>
    %25 = arith.truncf %24 : vector<256x256xf32> to vector<256x256xbf16>
    %c0_18 = arith.constant 0 : index
    %c0_19 = arith.constant 0 : index
    %26 = vector.load %arg8[%c0_18, %c0_19] : memref<256x128xbf16, #tpu.memory_space<vmem>>, vector<256x128xbf16>
    %cst_20 = arith.constant dense<0.000000e+00> : vector<256x128xf32>
    %27 = tpu.matmul %25, %26, %cst_20 {dimension_numbers = #tpu.dot_dimension_numbers<[1], [0], [0], [1], [0, 0, 1, 1], [], []>} : vector<256x256xbf16>, vector<256x128xbf16>, vector<256x128xf32> -> vector<256x128xf32>
    %c0_21 = arith.constant 0 : index
    %c0_22 = arith.constant 0 : index
    %28 = vector.load %arg9[%c0_21, %c0_22] : memref<1x128xf32, #tpu.memory_space<vmem>>, vector<1x128xf32>
    %29 = vector.broadcast %28 : vector<1x128xf32> to vector<256x128xf32>
    %30 = arith.addf %27, %29 : vector<256x128xf32>
    %c0_23 = arith.constant 0 : index
    %c0_24 = arith.constant 0 : index
    %31 = vector.load %arg10[%c0_23, %c0_24] : memref<256x128xf32, #tpu.memory_space<vmem>>, vector<256x128xf32>
    tpu.vector_store %arg10[%c0_23, %c0_24], %30 {strides = array<i32>} : memref<256x128xf32, #tpu.memory_space<vmem>>, vector<256x128xf32>,
    return
  }
  func.func @transform_0(%arg0: i32) -> (i32, i32) {
    %c0_i32 = arith.constant 0 : i32
    %c0_i32_0 = arith.constant 0 : i32
    return %arg0, %c0_i32 : i32, i32
  }
  func.func @transform_1(%arg0: i32) -> (i32, i32) {
    %c0_i32 = arith.constant 0 : i32
    %c0_i32_0 = arith.constant 0 : i32
    %c0_i32_1 = arith.constant 0 : i32
    return %c0_i32, %c0_i32_0 : i32, i32
  }
  func.func @transform_2(%arg0: i32) -> (i32, i32) {
    %c0_i32 = arith.constant 0 : i32
    %c0_i32_0 = arith.constant 0 : i32
    %c0_i32_1 = arith.constant 0 : i32
    return %c0_i32, %c0_i32_0 : i32, i32
  }
  func.func @transform_3(%arg0: i32) -> (i32, i32) {
    %c0_i32 = arith.constant 0 : i32
    %c0_i32_0 = arith.constant 0 : i32
    %c0_i32_1 = arith.constant 0 : i32
    return %c0_i32, %c0_i32_0 : i32, i32
  }
  func.func @transform_4(%arg0: i32) -> (i32, i32) {
    %c0_i32 = arith.constant 0 : i32
    %c0_i32_0 = arith.constant 0 : i32
    %c0_i32_1 = arith.constant 0 : i32
    return %c0_i32, %c0_i32_0 : i32, i32
  }
  func.func @transform_5(%arg0: i32) -> (i32, i32) {
    %c0_i32 = arith.constant 0 : i32
    %c0_i32_0 = arith.constant 0 : i32
    %c0_i32_1 = arith.constant 0 : i32
    return %c0_i32, %c0_i32_0 : i32, i32
  }
  func.func @transform_6(%arg0: i32) -> (i32, i32) {
    %c0_i32 = arith.constant 0 : i32
    %c0_i32_0 = arith.constant 0 : i32
    %c0_i32_1 = arith.constant 0 : i32
    return %c0_i32, %c0_i32_0 : i32, i32
  }
  func.func @transform_7(%arg0: i32) -> (i32, i32) {
    %c0_i32 = arith.constant 0 : i32
    %c0_i32_0 = arith.constant 0 : i32
    %c0_i32_1 = arith.constant 0 : i32
    return %c0_i32, %c0_i32_0 : i32, i32
  }
  func.func @transform_8(%arg0: i32) -> (i32, i32) {
    %c0_i32 = arith.constant 0 : i32
    %c0_i32_0 = arith.constant 0 : i32
    %c0_i32_1 = arith.constant 0 : i32
    return %c0_i32, %c0_i32_0 : i32, i32
  }
  func.func @transform_9(%arg0: i32) -> (i32, i32) {
    %c0_i32 = arith.constant 0 : i32
    %c0_i32_0 = arith.constant 0 : i32
    return %arg0, %c0_i32 : i32, i32
  }
}

</mosaic_0001>

<bundles_post_ra>
// kernel: tpu_custom_call.1
= control target key start
LH: loop header
LB: loop body
LE: loop exit
PB: predicated region body
PF: predicated region fallthrough
CT: control target
= control target key end

     0   :  { %14 = vsyncpa [#allocation3], 0  ;;  %s2815_s0 = inlined_call_operand.vmem [shape: f32[256,4], index: 0, kind: input, shape index: {}]   ;;  %s2816_s1 = inlined_call_operand.vmem [shape: bf16[4,256], index: 1, kind: input, shape index: {}]   ;;  %s2817_s2 = inlined_call_operand.vmem [shape: f32[1,256], index: 2, kind: input, shape index: {}]   ;;  %s2818_s3 = inlined_call_operand.vmem [shape: bf16[256,256], index: 3, kind: input, shape index: {}]   ;;  %s2819_s4 = inlined_call_operand.vmem [shape: f32[1,256], index: 4, kind: input, shape index: {}]   ;;  %s2820_s5 = inlined_call_operand.hbm [shape: bf16[256,256], index: 5, kind: input, shape index: {}]   ;;  %s2821_s6 = inlined_call_operand.vmem [shape: f32[1,256], index: 6, kind: input, shape index: {}]   ;;  %s2822_s7 = inlined_call_operand.hbm [shape: bf16[256,128], index: 7, kind: input, shape index: {}]   ;;  %s2823_s8 = inlined_call_operand.vmem [shape: f32[1,128], index: 8, kind: input, shape index: {}]   ;;  %s2824_s9 = inlined_call_operand.hbm [shape: f32[256,128], index: 9, kind: output, shape index: {}]  }
   0x1   :  { %15 = vsyncpa [#allocation6], 0 }
   0x2   :  { %16 = vsyncpa [#allocation4], 0  ;;  %s2228_s30 = smov [#allocation2]   ;;  %s2156_s13 = scalar_lea.hbm %s2820_s5, 4096 }
   0x3   :  { %s32_s10 = sshll.u32 %s2228_s30, 4  ;;  %p2157_p0 = scmp.ne.s32.totalorder %s2820_s5, %s2156_s13  ;;  %s33_s10 = int_to_ptr.vmem [resolvable:$true] %s32_s10 }
   0x4   :  { %p2160_p1 = scmp.lt.u32.totalorder %s2156_s13, %s2820_s5 }
   0x6   :  { %p2162_p2 = pnand %p2160_p1, %p2157_p0 }
   0x8   :  { %2165 = shalt.err (!%p2162_p2)
}
   0x9   :  { %s2166_s18 = scalar_lea.vmem %s33_s10, 4096  ;;  %p2171_p4 = scmp.lt.s32.totalorder %s33_s10, %s33_s10 }
   0xa   :  { %p2167_p3 = scmp.ne.s32.totalorder %s33_s10, %s2166_s18  ;;  %p2172_p5 = scmp.lt.s32.totalorder %s2166_s18, %s2166_s18 }
   0xc   :  { %p2173_p6 = por %p2172_p5, %p2171_p4 }
   0xe   :  { %p2174_p7 = pnand %p2173_p6, %p2167_p3 }
  0x10   :  { %2177 = shalt.err (!%p2174_p7)
}
  0x11   :  { %s2229_s19 = smov 128   ;;  %s2230_s20 = smov 8  }
  0x12   :  { %38 = dma.hbm_to_vmem [thread:$0]  %s2820_s5, 4096, %s33_s10, [#allocation3], %s2229_s19, %s2229_s19, %s2230_s20  }
  0x13   :  { %s2231_s23 = smov [#allocation5]   ;;  %s2178_s27 = scalar_lea.hbm %s2822_s7, 2048 }
  0x14   :  { %s46_s24 = sshll.u32 %s2231_s23, 4  ;;  %p2179_p8 = scmp.ne.s32.totalorder %s2822_s7, %s2178_s27  ;;  %s47_s24 = int_to_ptr.vmem [resolvable:$true] %s46_s24 }
  0x15   :  { %p2182_p9 = scmp.lt.u32.totalorder %s2178_s27, %s2822_s7 }
  0x17   :  { %p2184_p10 = pnand %p2182_p9, %p2179_p8 }
  0x19   :  { %2187 = shalt.err (!%p2184_p10)
}
  0x1a   :  { %s2188_s12 = scalar_lea.vmem %s47_s24, 2048  ;;  %p2193_p12 = scmp.lt.s32.totalorder %s47_s24, %s47_s24 }
  0x1b   :  { %p2189_p11 = scmp.ne.s32.totalorder %s47_s24, %s2188_s12  ;;  %p2194_p13 = scmp.lt.s32.totalorder %s2188_s12, %s2188_s12 }
  0x1d   :  { %p2195_p0 = por %p2194_p13, %p2193_p12 }
  0x1f   :  { %p2196_p1 = pnand %p2195_p0, %p2189_p11 }
  0x21   :  { %2199 = shalt.err (!%p2196_p1)
}
  0x22   :  { %s2232_s5 = smov 64   ;;  %s2233_s10 = smov 4  }
  0x23   :  { %52 = dma.hbm_to_vmem [thread:$0]  %s2822_s7, 2048, %s47_s24, [#allocation6], %s2232_s5, %s2232_s5, %s2233_s10  }
  0x24   :  { %2222 = dma.done.wait [#allocation3], 4096  }
  0x25   :  { %2223 = vsyncadd [#allocation3], 4294963200 }
  0x26   :  { %2224 = dma.done.wait [#allocation6], 2048  }
  0x27   :  { %2225 = vsyncadd [#allocation6], 4294965248  ;;  %v2234_v0 = vmov 0   ;;  %vm181_vm0 = vcmask 1041408   ;;  %v62_v2 = vld [vmem:[%s2815_s0] sm:$0xff]  ;;  %v63_v3 = vld [vmem:[%s2815_s0 + $0x8] sm:$0xff] }
  0x28   :  { %220 = vmatprep.mubr.bf16.mxu0 %v2234_v0  ;;  %v1809_v1 = vld.sshfl [vmem:[%s2816_s1] sm:$0x33 pattern:$0x76325410]  ;;  %v94_v6 = vpack.c.bf16 %v63_v3, %v62_v2  ;;  %vm132_vm1 = vcmask 31744   ;;  %v64_v7 = vld [vmem:[%s2815_s0 + $0x10] sm:$0xff] }
  0x29   :  { %v131_v4 = vcombine.high %v1809_v1, %v1809_v1  ;;  %v183_v5 = vsel %vm181_vm0, %v1809_v1, 0  ;;  %v65_v8 = vld [vmem:[%s2815_s0 + $0x18] sm:$0xff]  ;;  %v2044_v10 = vld [vmem:[%s2818_s3 + $0x4] ss:$8 sps:$4 sm:$0xff]   ;;  %v2046_v11 = vld [vmem:[%s2818_s3] ss:$8 sps:$4 sm:$0xff]  }
  0x2a   :  { %v95_v9 = vpack.c.bf16 %v65_v8, %v64_v7  ;;  %681 = vmatprep.subr.bf16.mxu1 %v2044_v10  ;;  %v2047_v12 = vld [vmem:[%s2818_s3 + $0x14] ss:$8 sps:$4 sm:$0xff]   ;;  %v66_v13 = vld [vmem:[%s2815_s0 + $0x20] sm:$0xff]  ;;  %v2049_v14 = vld [vmem:[%s2818_s3 + $0x10] ss:$8 sps:$4 sm:$0xff]  }
  0x2b   :  { %1810 = vmatprep.subr.msk.bf16.mxu0 %vm181_vm0, %v131_v4  ;;  %682 = vmatpush1.bf16.msra.mxu1 %v2046_v11  ;;  %v2050_v15 = vld [vmem:[%s2818_s3 + $0x24] ss:$8 sps:$4 sm:$0xff]   ;;  %v2052_v17 = vld [vmem:[%s2818_s3 + $0x20] ss:$8 sps:$4 sm:$0xff]   ;;  %v2053_v19 = vld [vmem:[%s2818_s3 + $0x34] ss:$8 sps:$4 sm:$0xff]  }
  0x2c   :  { %189 = vmatpush1.bf16.msra.mxu0 %v183_v5  ;;  %683 = vmatprep.subr.bf16.mxu1 %v2047_v12  ;;  %v67_v16 = vld [vmem:[%s2815_s0 + $0x28] sm:$0xff]  ;;  %v68_v20 = vld [vmem:[%s2815_s0 + $0x30] sm:$0xff]  ;;  %v69_v23 = vld [vmem:[%s2815_s0 + $0x38] sm:$0xff] }
  0x2d   :  { %v96_v18 = vpack.c.bf16 %v67_v16, %v66_v13  ;;  %v2055_v21 = vld [vmem:[%s2818_s3 + $0x30] ss:$8 sps:$4 sm:$0xff]   ;;  %v2056_v22 = vld [vmem:[%s2818_s3 + $0x44] ss:$8 sps:$4 sm:$0xff]   ;;  %v2058_v24 = vld [vmem:[%s2818_s3 + $0x40] ss:$8 sps:$4 sm:$0xff]   ;;  %v97_v25 = vpack.c.bf16 %v69_v23, %v68_v20  ;;  %v113_v23 = vlaneseq }
  0x2e   :  { %v2059_v26 = vld [vmem:[%s2818_s3 + $0x54] ss:$8 sps:$4 sm:$0xff]   ;;  %v2061_v27 = vld [vmem:[%s2818_s3 + $0x50] ss:$8 sps:$4 sm:$0xff]   ;;  %v2062_v28 = vld [vmem:[%s2818_s3 + $0x64] ss:$8 sps:$4 sm:$0xff]  }
  0x2f   :  { %1811 = vmatmul.mubr.msk.bf16.vlgmr.msra.gmra.mrb[0].mxu0 %vm132_vm1, %v94_v6  ;;  %684 = vmatpush1.bf16.msra.mxu1 %v2049_v14  ;;  %v70_v29 = vld [vmem:[%s2815_s0 + $0x40] sm:$0xff]  ;;  %v71_v30 = vld [vmem:[%s2815_s0 + $0x48] sm:$0xff]  ;;  %v2065_v32 = vld [vmem:[%s2818_s3 + $0x74] ss:$8 sps:$4 sm:$0xff]  }
  0x30   :  { %230 = vmatprep.mubr.bf16.mxu0 %v2234_v0  ;;  %685 = vmatprep.subr.bf16.mxu1 %v2050_v15  ;;  %v2064_v31 = vld [vmem:[%s2818_s3 + $0x60] ss:$8 sps:$4 sm:$0xff]   ;;  %v98_v33 = vpack.c.bf16 %v71_v30, %v70_v29  ;;  %v2067_v34 = vld [vmem:[%s2818_s3 + $0x70] ss:$8 sps:$4 sm:$0xff]   ;;  %v2068_v35 = vld [vmem:[%s2818_s3 + $0x84] ss:$8 sps:$4 sm:$0xff]  }
  0x31   :  { %v72_v36 = vld [vmem:[%s2815_s0 + $0x50] sm:$0xff]  ;;  %v73_v37 = vld [vmem:[%s2815_s0 + $0x58] sm:$0xff]  ;;  %v2070_v38 = vld [vmem:[%s2818_s3 + $0x80] ss:$8 sps:$4 sm:$0xff]  }
  0x32   :  { %v2071_v39 = vld [vmem:[%s2818_s3 + $0x94] ss:$8 sps:$4 sm:$0xff]   ;;  %v99_v40 = vpack.c.bf16 %v73_v37, %v72_v36  ;;  %v2073_v41 = vld [vmem:[%s2818_s3 + $0x90] ss:$8 sps:$4 sm:$0xff]   ;;  %v2074_v42 = vld [vmem:[%s2818_s3 + $0xa4] ss:$8 sps:$4 sm:$0xff]  }
  0x33   :  { %686 = vmatpush1.bf16.msra.mxu1 %v2052_v17  ;;  %v74_v43 = vld [vmem:[%s2815_s0 + $0x60] sm:$0xff]  ;;  %v75_v44 = vld [vmem:[%s2815_s0 + $0x68] sm:$0xff]  ;;  %v2077_v46 = vld [vmem:[%s2818_s3 + $0xb4] ss:$8 sps:$4 sm:$0xff]  }
  0x34   :  { %687 = vmatprep.subr.bf16.mxu1 %v2053_v19  ;;  %v2076_v45 = vld [vmem:[%s2818_s3 + $0xa0] ss:$8 sps:$4 sm:$0xff]   ;;  %v100_v47 = vpack.c.bf16 %v75_v44, %v74_v43  ;;  %v2079_v48 = vld [vmem:[%s2818_s3 + $0xb0] ss:$8 sps:$4 sm:$0xff]   ;;  %v2080_v49 = vld [vmem:[%s2818_s3 + $0xc4] ss:$8 sps:$4 sm:$0xff]  }
  0x35   :  { %v76_v50 = vld [vmem:[%s2815_s0 + $0x70] sm:$0xff]  ;;  %v77_v51 = vld [vmem:[%s2815_s0 + $0x78] sm:$0xff]  ;;  %v2082_v52 = vld [vmem:[%s2818_s3 + $0xc0] ss:$8 sps:$4 sm:$0xff]  }
  0x36   :  { %v101_v53 = vpack.c.bf16 %v77_v51, %v76_v50  ;;  %v2083_v54 = vld [vmem:[%s2818_s3 + $0xd4] ss:$8 sps:$4 sm:$0xff]   ;;  %v78_v55 = vld [vmem:[%s2815_s0 + $0x80] sm:$0xff]  ;;  %v79_v56 = vld [vmem:[%s2815_s0 + $0x88] sm:$0xff] }
  0x37   :  { %1812 = vmatmul.mubr.msk.bf16.gmra.mrb[4].mxu0 %vm132_vm1, %v95_v9  ;;  %688 = vmatpush1.bf16.msra.mxu1 %v2055_v21  ;;  %v102_v57 = vpack.c.bf16 %v79_v56, %v78_v55  ;;  %v80_v58 = vld [vmem:[%s2815_s0 + $0x90] sm:$0xff]  ;;  %v81_v59 = vld [vmem:[%s2815_s0 + $0x98] sm:$0xff]  ;;  %v82_v61 = vld [vmem:[%s2815_s0 + $0xa0] sm:$0xff] }
  0x38   :  { %240 = vmatprep.mubr.bf16.mxu0 %v2234_v0  ;;  %689 = vmatprep.subr.bf16.mxu1 %v2056_v22  ;;  %v103_v60 = vpack.c.bf16 %v81_v59, %v80_v58  ;;  %v83_v62 = vld [vmem:[%s2815_s0 + $0xa8] sm:$0xff]  ;;  %v84_v1 = vld [vmem:[%s2815_s0 + $0xb0] sm:$0xff]  ;;  %v85_v2 = vld [vmem:[%s2815_s0 + $0xb8] sm:$0xff] }
  0x39   :  { %v104_v63 = vpack.c.bf16 %v83_v62, %v82_v61  ;;  %v2085_v3 = vld [vmem:[%s2818_s3 + $0xd0] ss:$8 sps:$4 sm:$0xff]   ;;  %v105_v4 = vpack.c.bf16 %v85_v2, %v84_v1  ;;  %v2086_v5 = vld [vmem:[%s2818_s3 + $0xe4] ss:$8 sps:$4 sm:$0xff]   ;;  %v2088_v6 = vld [vmem:[%s2818_s3 + $0xe0] ss:$8 sps:$4 sm:$0xff]  }
  0x3a   :  { %v2089_v7 = vld [vmem:[%s2818_s3 + $0xf4] ss:$8 sps:$4 sm:$0xff]   ;;  %v86_v8 = vld [vmem:[%s2815_s0 + $0xc0] sm:$0xff]  ;;  %v87_v9 = vld [vmem:[%s2815_s0 + $0xc8] sm:$0xff] }
  0x3b   :  { %690 = vmatpush1.bf16.msra.mxu1 %v2058_v24  ;;  %v2091_v10 = vld [vmem:[%s2818_s3 + $0xf0] ss:$8 sps:$4 sm:$0xff]   ;;  %v106_v11 = vpack.c.bf16 %v87_v9, %v86_v8  ;;  %v90_v15 = vld [vmem:[%s2815_s0 + $0xe0] sm:$0xff]  ;;  %v91_v16 = vld [vmem:[%s2815_s0 + $0xe8] sm:$0xff] }
  0x3c   :  { %691 = vmatprep.subr.bf16.mxu1 %v2059_v26  ;;  %v88_v12 = vld [vmem:[%s2815_s0 + $0xd0] sm:$0xff]  ;;  %v89_v13 = vld [vmem:[%s2815_s0 + $0xd8] sm:$0xff]  ;;  %v108_v17 = vpack.c.bf16 %v91_v16, %v90_v15  ;;  %v2092_v21 = vld [vmem:[#allocation2] ss:$8 sps:$4 sm:$0xff]   ;;  %v114_v26 = vshrl.u32 %v113_v23, 7 }
  0x3d   :  { %v107_v14 = vpack.c.bf16 %v89_v13, %v88_v12  ;;  %v93_v19 = vld [vmem:[%s2815_s0 + $0xf8] sm:$0xff]  ;;  %v2094_v22 = vld [vmem:[#allocation2 + $0x4] ss:$8 sps:$4 sm:$0xff]   ;;  %v2098_v29 = vld [vmem:[#allocation2 + $0x20] ss:$8 sps:$4 sm:$0xff]  }
  0x3e   :  { %1174 = vmatprep.subr.bf16.mxu0 %v2094_v22  ;;  %v2095_v24 = vld [vmem:[#allocation2 + $0x10] ss:$8 sps:$4 sm:$0xff]   ;;  %v2100_v30 = vld [vmem:[#allocation2 + $0x24] ss:$8 sps:$4 sm:$0xff]   ;;  %v2110_v61 = vld [vmem:[#allocation2 + $0x60] ss:$8 sps:$4 sm:$0xff]  }
  0x3f   :  { %1813 = vmatmul.mubr.msk.bf16.gmra.mrb[8].mxu0 %vm132_vm1, %v96_v18  ;;  %692 = vmatpush1.bf16.msra.mxu1 %v2061_v27  ;;  %v92_v18 = vld [vmem:[%s2815_s0 + $0xf0] sm:$0xff]  ;;  %v111_v27 = vld [vmem:[%s2817_s2] sm:$0x3]  ;;  %v2106_v43 = vld [vmem:[#allocation2 + $0x44] ss:$8 sps:$4 sm:$0xff]  }
  0x40   :  { %250 = vmatprep.mubr.bf16.mxu0 %v2234_v0  ;;  %693 = vmatprep.subr.bf16.mxu1 %v2062_v28  ;;  %v109_v20 = vpack.c.bf16 %v93_v19, %v92_v18  ;;  %v2545_v28 = vsub.s32 1, %v114_v26  ;;  %v2107_v51 = vld [vmem:[#allocation2 + $0x50] ss:$8 sps:$4 sm:$0xff]   ;;  %v2118_v9 = vld [vmem:[#allocation2 + $0x84] ss:$8 sps:$4 sm:$0xff]  }
  0x41   :  { %1175 = vmatpush1.bf16.msra.mxu0 %v2092_v21  ;;  %v2116_v16 = vld [vmem:[#allocation2 + $0x80] ss:$8 sps:$4 sm:$0xff]   ;;  %v2121_v18 = vld [vmem:[#allocation2 + $0x94] ss:$8 sps:$4 sm:$0xff]  }
  0x43   :  { %694 = vmatpush1.bf16.msra.mxu1 %v2064_v31 }
  0x44   :  { %695 = vmatprep.subr.bf16.mxu1 %v2065_v32  ;;  %v2551_v32 = vrot.slane %v111_v27, %v2545_v28 }
  0x47   :  { %1814 = vmatmul.mubr.msk.bf16.gmra.mrb[12].mxu0 %vm132_vm1, %v97_v25  ;;  %696 = vmatpush1.bf16.msra.mxu1 %v2067_v34  ;;  %v2097_v25 = vld [vmem:[#allocation2 + $0x14] ss:$8 sps:$4 sm:$0xff]   ;;  %v2101_v34 = vld [vmem:[#allocation2 + $0x30] ss:$8 sps:$4 sm:$0xff]  }
  0x48   :  { %260 = vmatprep.mubr.bf16.mxu0 %v2234_v0  ;;  %697 = vmatprep.subr.bf16.mxu1 %v2068_v35  ;;  %v2103_v35 = vld [vmem:[#allocation2 + $0x34] ss:$8 sps:$4 sm:$0xff]  }
  0x49   :  { %1176 = vmatprep.subr.bf16.mxu0 %v2097_v25 }
  0x4a   :  { %1177 = vmatpush1.bf16.msra.mxu0 %v2095_v24  ;;  %v2119_v24 = vld [vmem:[#allocation2 + $0x90] ss:$8 sps:$4 sm:$0xff]  }
  0x4b   :  { %698 = vmatpush1.bf16.msra.mxu1 %v2070_v38  ;;  %1178 = vmatprep.subr.bf16.mxu0 %v2100_v30 }
  0x4c   :  { %699 = vmatprep.subr.bf16.mxu1 %v2071_v39 }
  0x4e   :  { %1179 = vmatpush1.bf16.msra.mxu0 %v2098_v29 }
  0x4f   :  { %1815 = vmatmul.mubr.msk.bf16.gmra.mrb[16].mxu0 %vm132_vm1, %v98_v33  ;;  %700 = vmatpush1.bf16.msra.mxu1 %v2073_v41 }
  0x50   :  { %270 = vmatprep.mubr.bf16.mxu0 %v2234_v0  ;;  %701 = vmatprep.subr.bf16.mxu1 %v2074_v42  ;;  %v2104_v42 = vld [vmem:[#allocation2 + $0x40] ss:$8 sps:$4 sm:$0xff]  }
  0x51   :  { %1180 = vmatprep.subr.bf16.mxu0 %v2103_v35 }
  0x52   :  { %1181 = vmatpush1.bf16.msra.mxu0 %v2101_v34 }
  0x53   :  { %702 = vmatpush1.bf16.msra.mxu1 %v2076_v45  ;;  %v2109_v45 = vld [vmem:[#allocation2 + $0x54] ss:$8 sps:$4 sm:$0xff]   ;;  %1182 = vmatprep.subr.bf16.mxu0 %v2106_v43 }
  0x54   :  { %703 = vmatprep.subr.bf16.mxu1 %v2077_v46 }
  0x56   :  { %1183 = vmatpush1.bf16.msra.mxu0 %v2104_v42 }
  0x57   :  { %1816 = vmatmul.mubr.msk.bf16.gmra.mrb[20].mxu0 %vm132_vm1, %v99_v40  ;;  %704 = vmatpush1.bf16.msra.mxu1 %v2079_v48 }
  0x58   :  { %280 = vmatprep.mubr.bf16.mxu0 %v2234_v0  ;;  %705 = vmatprep.subr.bf16.mxu1 %v2080_v49 }
  0x59   :  { %1184 = vmatprep.subr.bf16.mxu0 %v2109_v45  ;;  %v2125_v45 = vld [vmem:[#allocation2 + $0xb0] ss:$8 sps:$4 sm:$0xff]  }
  0x5a   :  { %1185 = vmatpush1.bf16.msra.mxu0 %v2107_v51 }
  0x5b   :  { %706 = vmatpush1.bf16.msra.mxu1 %v2082_v52 }
  0x5c   :  { %707 = vmatprep.subr.bf16.mxu1 %v2083_v54  ;;  %v2112_v54 = vld [vmem:[#allocation2 + $0x64] ss:$8 sps:$4 sm:$0xff]  }
  0x5d   :  { %1186 = vmatprep.subr.bf16.mxu0 %v2112_v54 }
  0x5e   :  { %1187 = vmatpush1.bf16.msra.mxu0 %v2110_v61 }
  0x5f   :  { %1817 = vmatmul.mubr.msk.bf16.gmra.mrb[24].mxu0 %vm132_vm1, %v100_v47  ;;  %708 = vmatpush1.bf16.msra.mxu1 %v2085_v3 }
  0x60   :  { %290 = vmatprep.mubr.bf16.mxu0 %v2234_v0  ;;  %709 = vmatprep.subr.bf16.mxu1 %v2086_v5 }
  0x63   :  { %710 = vmatpush1.bf16.msra.mxu1 %v2088_v6  ;;  %v2113_v6 = vld [vmem:[#allocation2 + $0x70] ss:$8 sps:$4 sm:$0xff]  }
  0x64   :  { %711 = vmatprep.subr.bf16.mxu1 %v2089_v7 }
  0x67   :  { %1818 = vmatmul.mubr.msk.bf16.gmra.mrb[28].mxu0 %vm132_vm1, %v101_v53  ;;  %712 = vmatpush1.bf16.msra.mxu1 %v2091_v10 }
  0x68   :  { %300 = vmatprep.mubr.bf16.mxu0 %v2234_v0 }
  0x6f   :  { %1819 = vmatmul.mubr.msk.bf16.gmra.mrb[32].mxu0 %vm132_vm1, %v102_v57 }
  0x70   :  { %310 = vmatprep.mubr.bf16.mxu0 %v2234_v0 }
  0x77   :  { %1820 = vmatmul.mubr.msk.bf16.gmra.mrb[36].mxu0 %vm132_vm1, %v103_v60 }
  0x78   :  { %320 = vmatprep.mubr.bf16.mxu0 %v2234_v0 }
  0x7f   :  { %1821 = vmatmul.mubr.msk.bf16.gmra.mrb[40].mxu0 %vm132_vm1, %v104_v63  ;;  %v2115_v63 = vld [vmem:[#allocation2 + $0x74] ss:$8 sps:$4 sm:$0xff]  }
  0x80   :  { %330 = vmatprep.mubr.bf16.mxu0 %v2234_v0  ;;  %1188 = vmatprep.subr.bf16.mxu0 %v2115_v63  ;;  %v2131_v63 = vld [vmem:[#allocation2 + $0xd0] ss:$8 sps:$4 sm:$0xff]  }
  0x81   :  { %1189 = vmatpush1.bf16.msra.mxu0 %v2113_v6 }
  0x82   :  { %1190 = vmatprep.subr.bf16.mxu0 %v2118_v9 }
  0x85   :  { %1191 = vmatpush1.bf16.msra.mxu0 %v2116_v16 }
  0x86   :  { %1192 = vmatprep.subr.bf16.mxu0 %v2121_v18 }
  0x87   :  { %1822 = vmatmul.mubr.msk.bf16.gmra.mrb[44].mxu0 %vm132_vm1, %v105_v4 }
  0x88   :  { %340 = vmatprep.mubr.bf16.mxu0 %v2234_v0 }
  0x89   :  { %1193 = vmatpush1.bf16.msra.mxu0 %v2119_v24 }
  0x8f   :  { %1823 = vmatmul.mubr.msk.bf16.gmra.mrb[48].mxu0 %vm132_vm1, %v106_v11 }
  0x90   :  { %350 = vmatprep.mubr.bf16.mxu0 %v2234_v0 }
  0x97   :  { %1824 = vmatmul.mubr.msk.bf16.gmra.mrb[52].mxu0 %vm132_vm1, %v107_v14 }
  0x98   :  { %360 = vmatprep.mubr.bf16.mxu0 %v2234_v0 }
  0x9f   :  { %1825 = vmatmul.mubr.msk.bf16.gmra.mrb[56].mxu0 %vm132_vm1, %v108_v17 }
  0xa0   :  { %370 = vmatprep.mubr.bf16.mxu0 %v2234_v0  ;;  %v2540_v0 = vsub.s32 0, %v114_v26 }
  0xa2   :  { %v2548_v31 = vrot.slane %v111_v27, %v2540_v0  ;;  %v2124_v27 = vld [vmem:[#allocation2 + $0xa4] ss:$8 sps:$4 sm:$0xff]  }
  0xa3   :  { %1194 = vmatprep.subr.bf16.mxu0 %v2124_v27 }
  0xa7   :  { %1826 = vmatmul.mubr.msk.bf16.gmra.mrb[60].mxu0 %vm132_vm1, %v109_v20 }
 0x102   :  { %v222_v33 = vpop.f32.mrb[0].mxu0 }
 0x103   :  { %v223_v36 = vadd.f32 %v222_v33, %v2548_v31  ;;  %v224_v37 = vpop.f32.mrb[1].mxu0 }
 0x104   :  { %v225_v38 = vadd.f32 %v224_v37, %v2551_v32  ;;  %v226_v39 = vpop.f32.mrb[2].mxu0  ;;  %v2122_v37 = vld [vmem:[#allocation2 + $0xa0] ss:$8 sps:$4 sm:$0xff]  }
 0x105   :  { %v227_v40 = vadd.f32 %v226_v39, %v2548_v31  ;;  %v228_v41 = vpop.f32.mrb[3].mxu0  ;;  %v381_v46 = vmax.f32 %v223_v36, 0.0  ;;  %v2127_v39 = vld [vmem:[#allocation2 + $0xb4] ss:$8 sps:$4 sm:$0xff]   ;;  %1195 = vmatpush1.bf16.msra.mxu0 %v2122_v37 }
 0x106   :  { %v229_v44 = vadd.f32 %v228_v41, %v2551_v32  ;;  %v382_v48 = vmax.f32 %v225_v38, 0.0  ;;  %1196 = vmatprep.subr.bf16.mxu0 %v2127_v39 }
 0x107   :  { %v383_v47 = vmax.f32 %v227_v40, 0.0 }
 0x108   :  { %v384_v49 = vmax.f32 %v229_v44, 0.0 }
 0x109   :  { %v445_v50 = vpack.c.bf16 %v383_v47, %v381_v46  ;;  %1197 = vmatpush1.bf16.msra.mxu0 %v2125_v45 }
 0x10a   :  { %v232_v52 = vpop.f32.mrb[4].mxu0  ;;  %v446_v53 = vpack.c.bf16 %v384_v49, %v382_v48  ;;  %v2130_v48 = vld [vmem:[#allocation2 + $0xc4] ss:$8 sps:$4 sm:$0xff]  }
 0x10b   :  { %v233_v55 = vadd.f32 %v232_v52, %v2548_v31  ;;  %v234_v56 = vpop.f32.mrb[5].mxu0  ;;  %1198 = vmatprep.subr.bf16.mxu0 %v2130_v48 }
 0x10c   :  { %v235_v57 = vadd.f32 %v234_v56, %v2551_v32  ;;  %v236_v58 = vpop.f32.mrb[6].mxu0  ;;  %713 = vmatprep.mubr.bf16.mxu1 %v446_v53 }
 0x10d   :  { %v237_v59 = vadd.f32 %v236_v58, %v2548_v31  ;;  %v238_v60 = vpop.f32.mrb[7].mxu0  ;;  %714 = vmatmul.mubr.bf16.vlgmr.msra.gmra.mrb[0].mxu1 %v445_v50  ;;  %v385_v1 = vmax.f32 %v233_v55, 0.0  ;;  %v2128_v55 = vld [vmem:[#allocation2 + $0xc0] ss:$8 sps:$4 sm:$0xff]  }
 0x10e   :  { %v239_v62 = vadd.f32 %v238_v60, %v2551_v32  ;;  %v386_v3 = vmax.f32 %v235_v57, 0.0  ;;  %v2133_v57 = vld [vmem:[#allocation2 + $0xd4] ss:$8 sps:$4 sm:$0xff]   ;;  %1199 = vmatpush1.bf16.msra.mxu0 %v2128_v55 }
 0x10f   :  { %v387_v2 = vmax.f32 %v237_v59, 0.0  ;;  %1200 = vmatprep.subr.bf16.mxu0 %v2133_v57 }
 0x110   :  { %v388_v4 = vmax.f32 %v239_v62, 0.0 }
 0x111   :  { %v447_v5 = vpack.c.bf16 %v387_v2, %v385_v1 }
 0x112   :  { %v448_v7 = vpack.c.bf16 %v388_v4, %v386_v3  ;;  %v242_v8 = vpop.f32.mrb[8].mxu0  ;;  %v2136_v3 = vld [vmem:[#allocation2 + $0xe4] ss:$8 sps:$4 sm:$0xff]   ;;  %1201 = vmatpush1.bf16.msra.mxu0 %v2131_v63 }
 0x113   :  { %v243_v10 = vadd.f32 %v242_v8, %v2548_v31  ;;  %v244_v11 = vpop.f32.mrb[9].mxu0  ;;  %1202 = vmatprep.subr.bf16.mxu0 %v2136_v3 }
 0x114   :  { %v245_v12 = vadd.f32 %v244_v11, %v2551_v32  ;;  %v246_v13 = vpop.f32.mrb[10].mxu0  ;;  %723 = vmatprep.mubr.bf16.mxu1 %v448_v7 }
 0x115   :  { %v247_v14 = vadd.f32 %v246_v13, %v2548_v31  ;;  %v248_v15 = vpop.f32.mrb[11].mxu0  ;;  %724 = vmatmul.mubr.bf16.gmra.mrb[4].mxu1 %v447_v5  ;;  %v389_v19 = vmax.f32 %v243_v10, 0.0  ;;  %v2134_v10 = vld [vmem:[#allocation2 + $0xe0] ss:$8 sps:$4 sm:$0xff]  }
 0x116   :  { %v249_v17 = vadd.f32 %v248_v15, %v2551_v32  ;;  %v390_v21 = vmax.f32 %v245_v12, 0.0  ;;  %1203 = vmatpush1.bf16.msra.mxu0 %v2134_v10 }
 0x117   :  { %v391_v20 = vmax.f32 %v247_v14, 0.0 }
 0x118   :  { %v392_v22 = vmax.f32 %v249_v17, 0.0 }
 0x119   :  { %v449_v23 = vpack.c.bf16 %v391_v20, %v389_v19 }
 0x11a   :  { %v450_v25 = vpack.c.bf16 %v392_v22, %v390_v21  ;;  %v252_v26 = vpop.f32.mrb[12].mxu0 }
 0x11b   :  { %v253_v29 = vadd.f32 %v252_v26, %v2548_v31  ;;  %v254_v30 = vpop.f32.mrb[13].mxu0 }
 0x11c   :  { %v255_v33 = vadd.f32 %v254_v30, %v2551_v32  ;;  %v256_v34 = vpop.f32.mrb[14].mxu0  ;;  %733 = vmatprep.mubr.bf16.mxu1 %v450_v25 }
 0x11d   :  { %v257_v35 = vadd.f32 %v256_v34, %v2548_v31  ;;  %v258_v36 = vpop.f32.mrb[15].mxu0  ;;  %734 = vmatmul.mubr.bf16.gmra.mrb[8].mxu1 %v449_v23  ;;  %v393_v40 = vmax.f32 %v253_v29, 0.0 }
 0x11e   :  { %v259_v38 = vadd.f32 %v258_v36, %v2551_v32  ;;  %v394_v42 = vmax.f32 %v255_v33, 0.0 }
 0x11f   :  { %v395_v41 = vmax.f32 %v257_v35, 0.0 }
 0x120   :  { %v396_v43 = vmax.f32 %v259_v38, 0.0 }
 0x121   :  { %v451_v44 = vpack.c.bf16 %v395_v41, %v393_v40 }
 0x122   :  { %v452_v46 = vpack.c.bf16 %v396_v43, %v394_v42  ;;  %v262_v47 = vpop.f32.mrb[16].mxu0 }
 0x123   :  { %v263_v49 = vadd.f32 %v262_v47, %v2548_v31  ;;  %v264_v50 = vpop.f32.mrb[17].mxu0 }
 0x124   :  { %v265_v51 = vadd.f32 %v264_v50, %v2551_v32  ;;  %v266_v52 = vpop.f32.mrb[18].mxu0  ;;  %743 = vmatprep.mubr.bf16.mxu1 %v452_v46 }
 0x125   :  { %v267_v53 = vadd.f32 %v266_v52, %v2548_v31  ;;  %v268_v54 = vpop.f32.mrb[19].mxu0  ;;  %744 = vmatmul.mubr.bf16.gmra.mrb[12].mxu1 %v451_v44  ;;  %v397_v58 = vmax.f32 %v263_v49, 0.0 }
 0x126   :  { %v269_v56 = vadd.f32 %v268_v54, %v2551_v32  ;;  %v398_v60 = vmax.f32 %v265_v51, 0.0 }
 0x127   :  { %v399_v59 = vmax.f32 %v267_v53, 0.0 }
 0x128   :  { %v400_v61 = vmax.f32 %v269_v56, 0.0 }
 0x129   :  { %v453_v62 = vpack.c.bf16 %v399_v59, %v397_v58 }
 0x12a   :  { %v454_v1 = vpack.c.bf16 %v400_v61, %v398_v60  ;;  %v272_v2 = vpop.f32.mrb[20].mxu0 }
 0x12b   :  { %v273_v4 = vadd.f32 %v272_v2, %v2548_v31  ;;  %v274_v5 = vpop.f32.mrb[21].mxu0 }
 0x12c   :  { %v275_v6 = vadd.f32 %v274_v5, %v2551_v32  ;;  %v276_v7 = vpop.f32.mrb[22].mxu0  ;;  %753 = vmatprep.mubr.bf16.mxu1 %v454_v1 }
 0x12d   :  { %v277_v8 = vadd.f32 %v276_v7, %v2548_v31  ;;  %v278_v9 = vpop.f32.mrb[23].mxu0  ;;  %754 = vmatmul.mubr.bf16.gmra.mrb[16].mxu1 %v453_v62  ;;  %v401_v12 = vmax.f32 %v273_v4, 0.0 }
 0x12e   :  { %v279_v11 = vadd.f32 %v278_v9, %v2551_v32  ;;  %v402_v14 = vmax.f32 %v275_v6, 0.0 }
 0x12f   :  { %v403_v13 = vmax.f32 %v277_v8, 0.0 }
 0x130   :  { %v404_v15 = vmax.f32 %v279_v11, 0.0 }
 0x131   :  { %v455_v16 = vpack.c.bf16 %v403_v13, %v401_v12 }
 0x132   :  { %v456_v17 = vpack.c.bf16 %v404_v15, %v402_v14  ;;  %v282_v18 = vpop.f32.mrb[24].mxu0 }
 0x133   :  { %v283_v19 = vadd.f32 %v282_v18, %v2548_v31  ;;  %v284_v20 = vpop.f32.mrb[25].mxu0 }
 0x134   :  { %v285_v21 = vadd.f32 %v284_v20, %v2551_v32  ;;  %v286_v22 = vpop.f32.mrb[26].mxu0  ;;  %763 = vmatprep.mubr.bf16.mxu1 %v456_v17 }
 0x135   :  { %v287_v23 = vadd.f32 %v286_v22, %v2548_v31  ;;  %v288_v24 = vpop.f32.mrb[27].mxu0  ;;  %764 = vmatmul.mubr.bf16.gmra.mrb[20].mxu1 %v455_v16  ;;  %v405_v26 = vmax.f32 %v283_v19, 0.0 }
 0x136   :  { %v289_v25 = vadd.f32 %v288_v24, %v2551_v32  ;;  %v406_v29 = vmax.f32 %v285_v21, 0.0 }
 0x137   :  { %v407_v27 = vmax.f32 %v287_v23, 0.0 }
 0x138   :  { %v408_v30 = vmax.f32 %v289_v25, 0.0 }
 0x139   :  { %v457_v33 = vpack.c.bf16 %v407_v27, %v405_v26 }
 0x13a   :  { %v458_v34 = vpack.c.bf16 %v408_v30, %v406_v29  ;;  %v292_v35 = vpop.f32.mrb[28].mxu0 }
 0x13b   :  { %v293_v36 = vadd.f32 %v292_v35, %v2548_v31  ;;  %v294_v37 = vpop.f32.mrb[29].mxu0 }
 0x13c   :  { %v295_v38 = vadd.f32 %v294_v37, %v2551_v32  ;;  %v296_v39 = vpop.f32.mrb[30].mxu0  ;;  %773 = vmatprep.mubr.bf16.mxu1 %v458_v34 }
 0x13d   :  { %v297_v40 = vadd.f32 %v296_v39, %v2548_v31  ;;  %v298_v41 = vpop.f32.mrb[31].mxu0  ;;  %774 = vmatmul.mubr.bf16.gmra.mrb[24].mxu1 %v457_v33  ;;  %v409_v43 = vmax.f32 %v293_v36, 0.0 }
 0x13e   :  { %v299_v42 = vadd.f32 %v298_v41, %v2551_v32  ;;  %v410_v45 = vmax.f32 %v295_v38, 0.0 }
 0x13f   :  { %v411_v44 = vmax.f32 %v297_v40, 0.0 }
 0x140   :  { %v412_v46 = vmax.f32 %v299_v42, 0.0 }
 0x141   :  { %v459_v47 = vpack.c.bf16 %v411_v44, %v409_v43 }
 0x142   :  { %v460_v48 = vpack.c.bf16 %v412_v46, %v410_v45  ;;  %v302_v49 = vpop.f32.mrb[32].mxu0 }
 0x143   :  { %v303_v50 = vadd.f32 %v302_v49, %v2548_v31  ;;  %v304_v51 = vpop.f32.mrb[33].mxu0 }
 0x144   :  { %v305_v52 = vadd.f32 %v304_v51, %v2551_v32  ;;  %v306_v53 = vpop.f32.mrb[34].mxu0  ;;  %783 = vmatprep.mubr.bf16.mxu1 %v460_v48 }
 0x145   :  { %v307_v54 = vadd.f32 %v306_v53, %v2548_v31  ;;  %v308_v55 = vpop.f32.mrb[35].mxu0  ;;  %784 = vmatmul.mubr.bf16.gmra.mrb[28].mxu1 %v459_v47  ;;  %v413_v57 = vmax.f32 %v303_v50, 0.0 }
 0x146   :  { %v309_v56 = vadd.f32 %v308_v55, %v2551_v32  ;;  %v414_v59 = vmax.f32 %v305_v52, 0.0  ;;  %v2139_v52 = vld [vmem:[#allocation2 + $0xf4] ss:$8 sps:$4 sm:$0xff]  }
 0x147   :  { %v415_v58 = vmax.f32 %v307_v54, 0.0  ;;  %v2137_v54 = vld [vmem:[#allocation2 + $0xf0] ss:$8 sps:$4 sm:$0xff]   ;;  %1204 = vmatprep.subr.bf16.mxu0 %v2139_v52 }
 0x148   :  { %v416_v60 = vmax.f32 %v309_v56, 0.0  ;;  %1205 = vmatpush1.bf16.msra.mxu0 %v2137_v54 }
 0x149   :  { %v461_v61 = vpack.c.bf16 %v415_v58, %v413_v57 }
 0x14a   :  { %v462_v62 = vpack.c.bf16 %v416_v60, %v414_v59  ;;  %v312_v63 = vpop.f32.mrb[36].mxu0 }
 0x14b   :  { %v313_v1 = vadd.f32 %v312_v63, %v2548_v31  ;;  %v314_v2 = vpop.f32.mrb[37].mxu0 }
 0x14c   :  { %v315_v3 = vadd.f32 %v314_v2, %v2551_v32  ;;  %v316_v4 = vpop.f32.mrb[38].mxu0  ;;  %793 = vmatprep.mubr.bf16.mxu1 %v462_v62 }
 0x14d   :  { %v317_v5 = vadd.f32 %v316_v4, %v2548_v31  ;;  %v318_v6 = vpop.f32.mrb[39].mxu0  ;;  %794 = vmatmul.mubr.bf16.gmra.mrb[32].mxu1 %v461_v61  ;;  %v417_v8 = vmax.f32 %v313_v1, 0.0 }
 0x14e   :  { %v319_v7 = vadd.f32 %v318_v6, %v2551_v32  ;;  %v418_v10 = vmax.f32 %v315_v3, 0.0 }
 0x14f   :  { %v419_v9 = vmax.f32 %v317_v5, 0.0 }
 0x150   :  { %v420_v11 = vmax.f32 %v319_v7, 0.0 }
 0x151   :  { %v463_v12 = vpack.c.bf16 %v419_v9, %v417_v8 }
 0x152   :  { %v464_v13 = vpack.c.bf16 %v420_v11, %v418_v10  ;;  %v322_v14 = vpop.f32.mrb[40].mxu0 }
 0x153   :  { %v323_v15 = vadd.f32 %v322_v14, %v2548_v31  ;;  %v324_v16 = vpop.f32.mrb[41].mxu0 }
 0x154   :  { %v325_v17 = vadd.f32 %v324_v16, %v2551_v32  ;;  %v326_v18 = vpop.f32.mrb[42].mxu0  ;;  %803 = vmatprep.mubr.bf16.mxu1 %v464_v13 }
 0x155   :  { %v327_v19 = vadd.f32 %v326_v18, %v2548_v31  ;;  %v328_v20 = vpop.f32.mrb[43].mxu0  ;;  %804 = vmatmul.mubr.bf16.gmra.mrb[36].mxu1 %v463_v12  ;;  %v421_v22 = vmax.f32 %v323_v15, 0.0 }
 0x156   :  { %v329_v21 = vadd.f32 %v328_v20, %v2551_v32  ;;  %v422_v24 = vmax.f32 %v325_v17, 0.0 }
 0x157   :  { %v423_v23 = vmax.f32 %v327_v19, 0.0 }
 0x158   :  { %v424_v25 = vmax.f32 %v329_v21, 0.0 }
 0x159   :  { %v465_v26 = vpack.c.bf16 %v423_v23, %v421_v22 }
 0x15a   :  { %v466_v27 = vpack.c.bf16 %v424_v25, %v422_v24  ;;  %v332_v29 = vpop.f32.mrb[44].mxu0 }
 0x15b   :  { %v333_v30 = vadd.f32 %v332_v29, %v2548_v31  ;;  %v334_v33 = vpop.f32.mrb[45].mxu0 }
 0x15c   :  { %v335_v34 = vadd.f32 %v334_v33, %v2551_v32  ;;  %v336_v35 = vpop.f32.mrb[46].mxu0  ;;  %813 = vmatprep.mubr.bf16.mxu1 %v466_v27 }
 0x15d   :  { %v337_v36 = vadd.f32 %v336_v35, %v2548_v31  ;;  %v338_v37 = vpop.f32.mrb[47].mxu0  ;;  %814 = vmatmul.mubr.bf16.gmra.mrb[40].mxu1 %v465_v26  ;;  %v425_v39 = vmax.f32 %v333_v30, 0.0 }
 0x15e   :  { %v339_v38 = vadd.f32 %v338_v37, %v2551_v32  ;;  %v426_v41 = vmax.f32 %v335_v34, 0.0 }
 0x15f   :  { %v427_v40 = vmax.f32 %v337_v36, 0.0 }
 0x160   :  { %v428_v42 = vmax.f32 %v339_v38, 0.0 }
 0x161   :  { %v467_v43 = vpack.c.bf16 %v427_v40, %v425_v39 }
 0x162   :  { %v468_v44 = vpack.c.bf16 %v428_v42, %v426_v41  ;;  %v342_v45 = vpop.f32.mrb[48].mxu0 }
 0x163   :  { %v343_v46 = vadd.f32 %v342_v45, %v2548_v31  ;;  %v344_v47 = vpop.f32.mrb[49].mxu0 }
 0x164   :  { %v345_v48 = vadd.f32 %v344_v47, %v2551_v32  ;;  %v346_v49 = vpop.f32.mrb[50].mxu0  ;;  %823 = vmatprep.mubr.bf16.mxu1 %v468_v44 }
 0x165   :  { %v347_v50 = vadd.f32 %v346_v49, %v2548_v31  ;;  %v348_v51 = vpop.f32.mrb[51].mxu0  ;;  %824 = vmatmul.mubr.bf16.gmra.mrb[44].mxu1 %v467_v43  ;;  %v429_v55 = vmax.f32 %v343_v46, 0.0  ;;  %v509_v43 = vld [vmem:[%s2819_s4] sm:$0x3] }
 0x166   :  { %v349_v53 = vadd.f32 %v348_v51, %v2551_v32  ;;  %v430_v57 = vmax.f32 %v345_v48, 0.0  ;;  %v2621_v44 = vrot.slane %v509_v43, %v2540_v0  ;;  %v2141_v48 = vld [vmem:[#allocation5] sm:$0xff]  }
 0x167   :  { %v431_v56 = vmax.f32 %v347_v50, 0.0 }
 0x168   :  { %v432_v58 = vmax.f32 %v349_v53, 0.0  ;;  %v2142_v53 = vld [vmem:[#allocation5 + $0x48] sm:$0xff]  }
 0x169   :  { %v469_v59 = vpack.c.bf16 %v431_v56, %v429_v55 }
 0x16a   :  { %v470_v60 = vpack.c.bf16 %v432_v58, %v430_v57  ;;  %v352_v61 = vpop.f32.mrb[52].mxu0  ;;  %v2143_v57 = vld [vmem:[#allocation5 + $0x8] sm:$0xff]  }
 0x16b   :  { %v353_v62 = vadd.f32 %v352_v61, %v2548_v31  ;;  %v354_v63 = vpop.f32.mrb[53].mxu0 }
 0x16c   :  { %v355_v1 = vadd.f32 %v354_v63, %v2551_v32  ;;  %v356_v2 = vpop.f32.mrb[54].mxu0  ;;  %833 = vmatprep.mubr.bf16.mxu1 %v470_v60  ;;  %v2144_v60 = vld [vmem:[#allocation5 + $0x50] sm:$0xff]  }
 0x16d   :  { %v357_v3 = vadd.f32 %v356_v2, %v2548_v31  ;;  %v358_v4 = vpop.f32.mrb[55].mxu0  ;;  %834 = vmatmul.mubr.bf16.gmra.mrb[48].mxu1 %v469_v59  ;;  %v433_v6 = vmax.f32 %v353_v62, 0.0 }
 0x16e   :  { %v359_v5 = vadd.f32 %v358_v4, %v2551_v32  ;;  %v434_v8 = vmax.f32 %v355_v1, 0.0 }
 0x16f   :  { %v435_v7 = vmax.f32 %v357_v3, 0.0  ;;  %v2145_v3 = vld [vmem:[#allocation5 + $0x10] sm:$0xff]  }
 0x170   :  { %v436_v9 = vmax.f32 %v359_v5, 0.0 }
 0x171   :  { %v471_v10 = vpack.c.bf16 %v435_v7, %v433_v6  ;;  %v2146_v6 = vld [vmem:[#allocation5 + $0x58] sm:$0xff]  }
 0x172   :  { %v472_v11 = vpack.c.bf16 %v436_v9, %v434_v8  ;;  %v362_v12 = vpop.f32.mrb[56].mxu0 }
 0x173   :  { %v363_v13 = vadd.f32 %v362_v12, %v2548_v31  ;;  %v364_v14 = vpop.f32.mrb[57].mxu0  ;;  %v2147_v12 = vld [vmem:[#allocation5 + $0x18] sm:$0xff]  }
 0x174   :  { %v365_v15 = vadd.f32 %v364_v14, %v2551_v32  ;;  %v366_v16 = vpop.f32.mrb[58].mxu0  ;;  %843 = vmatprep.mubr.bf16.mxu1 %v472_v11 }
 0x175   :  { %v367_v17 = vadd.f32 %v366_v16, %v2548_v31  ;;  %v368_v18 = vpop.f32.mrb[59].mxu0  ;;  %844 = vmatmul.mubr.bf16.gmra.mrb[52].mxu1 %v471_v10  ;;  %v437_v20 = vmax.f32 %v363_v13, 0.0 }
 0x176   :  { %v369_v19 = vadd.f32 %v368_v18, %v2551_v32  ;;  %v438_v22 = vmax.f32 %v365_v15, 0.0  ;;  %v2148_v15 = vld [vmem:[#allocation5 + $0x60] sm:$0xff]  }
 0x177   :  { %v439_v21 = vmax.f32 %v367_v17, 0.0 }
 0x178   :  { %v440_v23 = vmax.f32 %v369_v19, 0.0 }
 0x179   :  { %v473_v24 = vpack.c.bf16 %v439_v21, %v437_v20  ;;  %v2149_v21 = vld [vmem:[#allocation5 + $0x20] sm:$0xff]  }
 0x17a   :  { %v474_v25 = vpack.c.bf16 %v440_v23, %v438_v22  ;;  %v372_v26 = vpop.f32.mrb[60].mxu0 }
 0x17b   :  { %v373_v27 = vadd.f32 %v372_v26, %v2548_v31  ;;  %v374_v29 = vpop.f32.mrb[61].mxu0 }
 0x17c   :  { %v375_v30 = vadd.f32 %v374_v29, %v2551_v32  ;;  %v376_v33 = vpop.f32.mrb[62].mxu0  ;;  %853 = vmatprep.mubr.bf16.mxu1 %v474_v25 }
 0x17d   :  { %v377_v34 = vadd.f32 %v376_v33, %v2548_v31  ;;  %v378_v35 = vpop.f32.mrb[63].mxu0  ;;  %854 = vmatmul.mubr.bf16.gmra.mrb[56].mxu1 %v473_v24  ;;  %v441_v37 = vmax.f32 %v373_v27, 0.0  ;;  %v2624_v31 = vrot.slane %v509_v43, %v2545_v28  ;;  %v2150_v24 = vld [vmem:[#allocation5 + $0x68] sm:$0xff]  }
 0x17e   :  { %v379_v36 = vadd.f32 %v378_v35, %v2551_v32  ;;  %v442_v39 = vmax.f32 %v375_v30, 0.0  ;;  %v2140_v32 = vld [vmem:[#allocation5 + $0x40] sm:$0xff]   ;;  %v2151_v33 = vld [vmem:[#allocation5 + $0x28] sm:$0xff]  }
 0x17f   :  { %v443_v38 = vmax.f32 %v377_v34, 0.0  ;;  %2020 = vmatprep.subr.bf16.mxu1 %v2140_v32  ;;  %1908 = vmatprep.subr.bf16.mxu0 %v2140_v32 }
 0x180   :  { %v444_v40 = vmax.f32 %v379_v36, 0.0  ;;  %2028 = vmatpush3.bf16.msra.mxu1 %v2141_v48 }
 0x181   :  { %v475_v41 = vpack.c.bf16 %v443_v38, %v441_v37  ;;  %2021 = vmatprep.subr.bf16.mxu1 %v2142_v53 }
 0x182   :  { %v476_v42 = vpack.c.bf16 %v444_v40, %v442_v39 }
 0x184   :  { %863 = vmatprep.mubr.bf16.mxu1 %v476_v42  ;;  %2029 = vmatpush3.bf16.msra.mxu1 %v2143_v57 }
 0x185   :  { %864 = vmatmul.mubr.bf16.gmra.mrb[60].mxu1 %v475_v41  ;;  %2022 = vmatprep.subr.bf16.mxu1 %v2144_v60 }
 0x188   :  { %2030 = vmatpush3.bf16.msra.mxu1 %v2145_v3 }
 0x189   :  { %2023 = vmatprep.subr.bf16.mxu1 %v2146_v6 }
 0x18c   :  { %2031 = vmatpush3.bf16.msra.mxu1 %v2147_v12 }
 0x18d   :  { %2024 = vmatprep.subr.bf16.mxu1 %v2148_v15 }
 0x190   :  { %2032 = vmatpush3.bf16.msra.mxu1 %v2149_v21 }
 0x191   :  { %2025 = vmatprep.subr.bf16.mxu1 %v2150_v24 }
 0x194   :  { %2033 = vmatpush3.bf16.msra.mxu1 %v2151_v33 }
 0x1e0   :  { %v715_v45 = vpop.f32.mrb[0].mxu1 }
 0x1e1   :  { %v716_v46 = vadd.f32 %v715_v45, %v2621_v44  ;;  %v717_v47 = vpop.f32.mrb[1].mxu1 }
 0x1e2   :  { %v718_v49 = vadd.f32 %v717_v47, %v2624_v31  ;;  %v719_v50 = vpop.f32.mrb[2].mxu1 }
 0x1e3   :  { %v720_v51 = vadd.f32 %v719_v50, %v2621_v44  ;;  %v721_v52 = vpop.f32.mrb[3].mxu1  ;;  %v874_v55 = vmax.f32 %v716_v46, 0.0 }
 0x1e4   :  { %v722_v54 = vadd.f32 %v721_v52, %v2624_v31  ;;  %v875_v58 = vmax.f32 %v718_v49, 0.0 }
 0x1e5   :  { %v876_v56 = vmax.f32 %v720_v51, 0.0 }
 0x1e6   :  { %v877_v59 = vmax.f32 %v722_v54, 0.0 }
 0x1e7   :  { %v938_v61 = vpack.c.bf16 %v876_v56, %v874_v55 }
 0x1e8   :  { %v939_v62 = vpack.c.bf16 %v877_v59, %v875_v58  ;;  %v725_v63 = vpop.f32.mrb[4].mxu1 }
 0x1e9   :  { %v726_v1 = vadd.f32 %v725_v63, %v2621_v44  ;;  %v727_v2 = vpop.f32.mrb[5].mxu1 }
 0x1ea   :  { %v728_v4 = vadd.f32 %v727_v2, %v2624_v31  ;;  %v729_v5 = vpop.f32.mrb[6].mxu1  ;;  %1206 = vmatprep.mubr.bf16.mxu0 %v939_v62 }
 0x1eb   :  { %v730_v7 = vadd.f32 %v729_v5, %v2621_v44  ;;  %v731_v8 = vpop.f32.mrb[7].mxu1  ;;  %1207 = vmatmul.mubr.bf16.vlgmr.msra.gmra.mrb[64].mxu0 %v938_v61  ;;  %v878_v10 = vmax.f32 %v726_v1, 0.0 }
 0x1ec   :  { %v732_v9 = vadd.f32 %v731_v8, %v2624_v31  ;;  %1909 = vmatpush3.bf16.msra.mxu0 %v2141_v48  ;;  %v879_v13 = vmax.f32 %v728_v4, 0.0 }
 0x1ed   :  { %v880_v11 = vmax.f32 %v730_v7, 0.0  ;;  %1910 = vmatprep.subr.bf16.mxu0 %v2142_v53 }
 0x1ee   :  { %v881_v14 = vmax.f32 %v732_v9, 0.0 }
 0x1ef   :  { %v940_v16 = vpack.c.bf16 %v880_v11, %v878_v10 }
 0x1f0   :  { %v941_v17 = vpack.c.bf16 %v881_v14, %v879_v13  ;;  %v735_v18 = vpop.f32.mrb[8].mxu1  ;;  %1911 = vmatpush3.bf16.msra.mxu0 %v2143_v57 }
 0x1f1   :  { %v736_v19 = vadd.f32 %v735_v18, %v2621_v44  ;;  %v737_v20 = vpop.f32.mrb[9].mxu1  ;;  %1912 = vmatprep.subr.bf16.mxu0 %v2144_v60 }
 0x1f2   :  { %v738_v22 = vadd.f32 %v737_v20, %v2624_v31  ;;  %v739_v23 = vpop.f32.mrb[10].mxu1  ;;  %1216 = vmatprep.mubr.bf16.mxu0 %v941_v17 }
 0x1f3   :  { %v740_v25 = vadd.f32 %v739_v23, %v2621_v44  ;;  %v741_v26 = vpop.f32.mrb[11].mxu1  ;;  %1217 = vmatmul.mubr.bf16.gmra.mrb[68].mxu0 %v940_v16  ;;  %v882_v29 = vmax.f32 %v736_v19, 0.0 }
 0x1f4   :  { %v742_v27 = vadd.f32 %v741_v26, %v2624_v31  ;;  %1913 = vmatpush3.bf16.msra.mxu0 %v2145_v3  ;;  %v883_v34 = vmax.f32 %v738_v22, 0.0 }
 0x1f5   :  { %v884_v30 = vmax.f32 %v740_v25, 0.0  ;;  %1914 = vmatprep.subr.bf16.mxu0 %v2146_v6 }
 0x1f6   :  { %v885_v35 = vmax.f32 %v742_v27, 0.0 }
 0x1f7   :  { %v942_v36 = vpack.c.bf16 %v884_v30, %v882_v29 }
 0x1f8   :  { %v943_v37 = vpack.c.bf16 %v885_v35, %v883_v34  ;;  %v745_v38 = vpop.f32.mrb[12].mxu1  ;;  %1915 = vmatpush3.bf16.msra.mxu0 %v2147_v12 }
 0x1f9   :  { %v746_v39 = vadd.f32 %v745_v38, %v2621_v44  ;;  %v747_v40 = vpop.f32.mrb[13].mxu1  ;;  %1916 = vmatprep.subr.bf16.mxu0 %v2148_v15 }
 0x1fa   :  { %v748_v41 = vadd.f32 %v747_v40, %v2624_v31  ;;  %v749_v42 = vpop.f32.mrb[14].mxu1  ;;  %1226 = vmatprep.mubr.bf16.mxu0 %v943_v37 }
 0x1fb   :  { %v750_v43 = vadd.f32 %v749_v42, %v2621_v44  ;;  %v751_v45 = vpop.f32.mrb[15].mxu1  ;;  %1227 = vmatmul.mubr.bf16.gmra.mrb[72].mxu0 %v942_v36  ;;  %v886_v46 = vmax.f32 %v746_v39, 0.0 }
 0x1fc   :  { %v752_v32 = vadd.f32 %v751_v45, %v2624_v31  ;;  %1917 = vmatpush3.bf16.msra.mxu0 %v2149_v21  ;;  %v887_v48 = vmax.f32 %v748_v41, 0.0 }
 0x1fd   :  { %v888_v47 = vmax.f32 %v750_v43, 0.0  ;;  %1918 = vmatprep.subr.bf16.mxu0 %v2150_v24 }
 0x1fe   :  { %v889_v49 = vmax.f32 %v752_v32, 0.0 }
 0x1ff   :  { %v944_v50 = vpack.c.bf16 %v888_v47, %v886_v46 }
 0x200   :  { %v945_v51 = vpack.c.bf16 %v889_v49, %v887_v48  ;;  %v755_v52 = vpop.f32.mrb[16].mxu1  ;;  %1919 = vmatpush3.bf16.msra.mxu0 %v2151_v33 }
 0x201   :  { %v756_v53 = vadd.f32 %v755_v52, %v2621_v44  ;;  %v757_v54 = vpop.f32.mrb[17].mxu1 }
 0x202   :  { %v758_v55 = vadd.f32 %v757_v54, %v2624_v31  ;;  %v759_v56 = vpop.f32.mrb[18].mxu1  ;;  %1236 = vmatprep.mubr.bf16.mxu0 %v945_v51 }
 0x203   :  { %v760_v57 = vadd.f32 %v759_v56, %v2621_v44  ;;  %v761_v58 = vpop.f32.mrb[19].mxu1  ;;  %1237 = vmatmul.mubr.bf16.gmra.mrb[76].mxu0 %v944_v50  ;;  %v890_v60 = vmax.f32 %v756_v53, 0.0 }
 0x204   :  { %v762_v59 = vadd.f32 %v761_v58, %v2624_v31  ;;  %v891_v62 = vmax.f32 %v758_v55, 0.0 }
 0x205   :  { %v892_v61 = vmax.f32 %v760_v57, 0.0 }
 0x206   :  { %v893_v63 = vmax.f32 %v762_v59, 0.0 }
 0x207   :  { %v946_v1 = vpack.c.bf16 %v892_v61, %v890_v60 }
 0x208   :  { %v947_v2 = vpack.c.bf16 %v893_v63, %v891_v62  ;;  %v765_v3 = vpop.f32.mrb[20].mxu1 }
 0x209   :  { %v766_v4 = vadd.f32 %v765_v3, %v2621_v44  ;;  %v767_v5 = vpop.f32.mrb[21].mxu1 }
 0x20a   :  { %v768_v6 = vadd.f32 %v767_v5, %v2624_v31  ;;  %v769_v7 = vpop.f32.mrb[22].mxu1  ;;  %1246 = vmatprep.mubr.bf16.mxu0 %v947_v2 }
 0x20b   :  { %v770_v8 = vadd.f32 %v769_v7, %v2621_v44  ;;  %v771_v9 = vpop.f32.mrb[23].mxu1  ;;  %1247 = vmatmul.mubr.bf16.gmra.mrb[80].mxu0 %v946_v1  ;;  %v894_v11 = vmax.f32 %v766_v4, 0.0 }
 0x20c   :  { %v772_v10 = vadd.f32 %v771_v9, %v2624_v31  ;;  %v895_v13 = vmax.f32 %v768_v6, 0.0 }
 0x20d   :  { %v896_v12 = vmax.f32 %v770_v8, 0.0 }
 0x20e   :  { %v897_v14 = vmax.f32 %v772_v10, 0.0 }
 0x20f   :  { %v948_v15 = vpack.c.bf16 %v896_v12, %v894_v11 }
 0x210   :  { %v949_v16 = vpack.c.bf16 %v897_v14, %v895_v13  ;;  %v775_v17 = vpop.f32.mrb[24].mxu1 }
 0x211   :  { %v776_v18 = vadd.f32 %v775_v17, %v2621_v44  ;;  %v777_v19 = vpop.f32.mrb[25].mxu1 }
 0x212   :  { %v778_v20 = vadd.f32 %v777_v19, %v2624_v31  ;;  %v779_v21 = vpop.f32.mrb[26].mxu1  ;;  %1256 = vmatprep.mubr.bf16.mxu0 %v949_v16 }
 0x213   :  { %v780_v22 = vadd.f32 %v779_v21, %v2621_v44  ;;  %v781_v23 = vpop.f32.mrb[27].mxu1  ;;  %1257 = vmatmul.mubr.bf16.gmra.mrb[84].mxu0 %v948_v15  ;;  %v898_v25 = vmax.f32 %v776_v18, 0.0 }
 0x214   :  { %v782_v24 = vadd.f32 %v781_v23, %v2624_v31  ;;  %v899_v27 = vmax.f32 %v778_v20, 0.0 }
 0x215   :  { %v900_v26 = vmax.f32 %v780_v22, 0.0 }
 0x216   :  { %v901_v29 = vmax.f32 %v782_v24, 0.0 }
 0x217   :  { %v950_v30 = vpack.c.bf16 %v900_v26, %v898_v25 }
 0x218   :  { %v951_v33 = vpack.c.bf16 %v901_v29, %v899_v27  ;;  %v785_v34 = vpop.f32.mrb[28].mxu1 }
 0x219   :  { %v786_v35 = vadd.f32 %v785_v34, %v2621_v44  ;;  %v787_v36 = vpop.f32.mrb[29].mxu1 }
 0x21a   :  { %v788_v37 = vadd.f32 %v787_v36, %v2624_v31  ;;  %v789_v38 = vpop.f32.mrb[30].mxu1  ;;  %1266 = vmatprep.mubr.bf16.mxu0 %v951_v33 }
 0x21b   :  { %v790_v39 = vadd.f32 %v789_v38, %v2621_v44  ;;  %v791_v40 = vpop.f32.mrb[31].mxu1  ;;  %1267 = vmatmul.mubr.bf16.gmra.mrb[88].mxu0 %v950_v30  ;;  %v902_v42 = vmax.f32 %v786_v35, 0.0 }
 0x21c   :  { %v792_v41 = vadd.f32 %v791_v40, %v2624_v31  ;;  %v903_v45 = vmax.f32 %v788_v37, 0.0 }
 0x21d   :  { %v904_v43 = vmax.f32 %v790_v39, 0.0 }
 0x21e   :  { %v905_v32 = vmax.f32 %v792_v41, 0.0 }
 0x21f   :  { %v952_v46 = vpack.c.bf16 %v904_v43, %v902_v42  ;;  %v2152_v43 = vld [vmem:[#allocation5 + $0x70] sm:$0xff]  }
 0x220   :  { %v953_v47 = vpack.c.bf16 %v905_v32, %v903_v45  ;;  %v795_v48 = vpop.f32.mrb[32].mxu1  ;;  %2026 = vmatprep.subr.bf16.mxu1 %v2152_v43  ;;  %1920 = vmatprep.subr.bf16.mxu0 %v2152_v43 }
 0x221   :  { %v796_v49 = vadd.f32 %v795_v48, %v2621_v44  ;;  %v797_v50 = vpop.f32.mrb[33].mxu1 }
 0x222   :  { %v798_v51 = vadd.f32 %v797_v50, %v2624_v31  ;;  %v799_v52 = vpop.f32.mrb[34].mxu1  ;;  %1276 = vmatprep.mubr.bf16.mxu0 %v953_v47 }
 0x223   :  { %v800_v53 = vadd.f32 %v799_v52, %v2621_v44  ;;  %v801_v54 = vpop.f32.mrb[35].mxu1  ;;  %1277 = vmatmul.mubr.bf16.gmra.mrb[92].mxu0 %v952_v46  ;;  %v906_v56 = vmax.f32 %v796_v49, 0.0  ;;  %v2153_v46 = vld [vmem:[#allocation5 + $0x30] sm:$0xff]  }
 0x224   :  { %v802_v55 = vadd.f32 %v801_v54, %v2624_v31  ;;  %v907_v58 = vmax.f32 %v798_v51, 0.0  ;;  %2034 = vmatpush3.bf16.msra.mxu1 %v2153_v46  ;;  %1921 = vmatpush3.bf16.msra.mxu0 %v2153_v46 }
 0x225   :  { %v908_v57 = vmax.f32 %v800_v53, 0.0  ;;  %v2154_v53 = vld [vmem:[#allocation5 + $0x78] sm:$0xff]  }
 0x226   :  { %v909_v59 = vmax.f32 %v802_v55, 0.0  ;;  %v2155_v55 = vld [vmem:[#allocation5 + $0x38] sm:$0xff]   ;;  %1922 = vmatprep.subr.bf16.mxu0 %v2154_v53  ;;  %2027 = vmatprep.subr.bf16.mxu1 %v2154_v53 }
 0x227   :  { %v954_v60 = vpack.c.bf16 %v908_v57, %v906_v56 }
 0x228   :  { %v955_v61 = vpack.c.bf16 %v909_v59, %v907_v58  ;;  %v805_v62 = vpop.f32.mrb[36].mxu1  ;;  %2035 = vmatpush3.bf16.msra.mxu1 %v2155_v55  ;;  %1923 = vmatpush3.bf16.msra.mxu0 %v2155_v55 }
 0x229   :  { %v806_v63 = vadd.f32 %v805_v62, %v2621_v44  ;;  %v807_v1 = vpop.f32.mrb[37].mxu1 }
 0x22a   :  { %v808_v2 = vadd.f32 %v807_v1, %v2624_v31  ;;  %v809_v3 = vpop.f32.mrb[38].mxu1  ;;  %1286 = vmatprep.mubr.bf16.mxu0 %v955_v61 }
 0x22b   :  { %v810_v4 = vadd.f32 %v809_v3, %v2621_v44  ;;  %v811_v5 = vpop.f32.mrb[39].mxu1  ;;  %1287 = vmatmul.mubr.bf16.gmra.mrb[96].mxu0 %v954_v60  ;;  %v910_v7 = vmax.f32 %v806_v63, 0.0 }
 0x22c   :  { %v812_v6 = vadd.f32 %v811_v5, %v2624_v31  ;;  %v911_v9 = vmax.f32 %v808_v2, 0.0 }
 0x22d   :  { %v912_v8 = vmax.f32 %v810_v4, 0.0 }
 0x22e   :  { %v913_v10 = vmax.f32 %v812_v6, 0.0 }
 0x22f   :  { %v956_v11 = vpack.c.bf16 %v912_v8, %v910_v7 }
 0x230   :  { %v957_v12 = vpack.c.bf16 %v913_v10, %v911_v9  ;;  %v815_v13 = vpop.f32.mrb[40].mxu1 }
 0x231   :  { %v816_v14 = vadd.f32 %v815_v13, %v2621_v44  ;;  %v817_v15 = vpop.f32.mrb[41].mxu1 }
 0x232   :  { %v818_v16 = vadd.f32 %v817_v15, %v2624_v31  ;;  %v819_v17 = vpop.f32.mrb[42].mxu1  ;;  %1296 = vmatprep.mubr.bf16.mxu0 %v957_v12 }
 0x233   :  { %v820_v18 = vadd.f32 %v819_v17, %v2621_v44  ;;  %v821_v19 = vpop.f32.mrb[43].mxu1  ;;  %1297 = vmatmul.mubr.bf16.gmra.mrb[100].mxu0 %v956_v11  ;;  %v914_v21 = vmax.f32 %v816_v14, 0.0 }
 0x234   :  { %v822_v20 = vadd.f32 %v821_v19, %v2624_v31  ;;  %v915_v23 = vmax.f32 %v818_v16, 0.0 }
 0x235   :  { %v916_v22 = vmax.f32 %v820_v18, 0.0 }
 0x236   :  { %v917_v24 = vmax.f32 %v822_v20, 0.0 }
 0x237   :  { %v958_v25 = vpack.c.bf16 %v916_v22, %v914_v21 }
 0x238   :  { %v959_v26 = vpack.c.bf16 %v917_v24, %v915_v23  ;;  %v825_v27 = vpop.f32.mrb[44].mxu1 }
 0x239   :  { %v826_v29 = vadd.f32 %v825_v27, %v2621_v44  ;;  %v827_v30 = vpop.f32.mrb[45].mxu1 }
 0x23a   :  { %v828_v33 = vadd.f32 %v827_v30, %v2624_v31  ;;  %v829_v34 = vpop.f32.mrb[46].mxu1  ;;  %1306 = vmatprep.mubr.bf16.mxu0 %v959_v26 }
 0x23b   :  { %v830_v35 = vadd.f32 %v829_v34, %v2621_v44  ;;  %v831_v36 = vpop.f32.mrb[47].mxu1  ;;  %1307 = vmatmul.mubr.bf16.gmra.mrb[104].mxu0 %v958_v25  ;;  %v918_v38 = vmax.f32 %v826_v29, 0.0 }
 0x23c   :  { %v832_v37 = vadd.f32 %v831_v36, %v2624_v31  ;;  %v919_v40 = vmax.f32 %v828_v33, 0.0 }
 0x23d   :  { %v920_v39 = vmax.f32 %v830_v35, 0.0 }
 0x23e   :  { %v921_v41 = vmax.f32 %v832_v37, 0.0 }
 0x23f   :  { %v960_v42 = vpack.c.bf16 %v920_v39, %v918_v38 }
 0x240   :  { %v961_v45 = vpack.c.bf16 %v921_v41, %v919_v40  ;;  %v835_v32 = vpop.f32.mrb[48].mxu1 }
 0x241   :  { %v836_v47 = vadd.f32 %v835_v32, %v2621_v44  ;;  %v837_v48 = vpop.f32.mrb[49].mxu1 }
 0x242   :  { %v838_v49 = vadd.f32 %v837_v48, %v2624_v31  ;;  %v839_v50 = vpop.f32.mrb[50].mxu1  ;;  %1316 = vmatprep.mubr.bf16.mxu0 %v961_v45  ;;  %v1002_v45 = vld [vmem:[%s2821_s6] sm:$0x3] }
 0x243   :  { %v840_v51 = vadd.f32 %v839_v50, %v2621_v44  ;;  %v841_v52 = vpop.f32.mrb[51].mxu1  ;;  %1317 = vmatmul.mubr.bf16.gmra.mrb[108].mxu0 %v960_v42  ;;  %v922_v56 = vmax.f32 %v836_v47, 0.0  ;;  %v2694_v32 = vrot.slane %v1002_v45, %v2540_v0 }
 0x244   :  { %v842_v54 = vadd.f32 %v841_v52, %v2624_v31  ;;  %v923_v58 = vmax.f32 %v838_v49, 0.0 }
 0x245   :  { %v924_v57 = vmax.f32 %v840_v51, 0.0 }
 0x246   :  { %v925_v59 = vmax.f32 %v842_v54, 0.0 }
 0x247   :  { %v962_v60 = vpack.c.bf16 %v924_v57, %v922_v56 }
 0x248   :  { %v963_v61 = vpack.c.bf16 %v925_v59, %v923_v58  ;;  %v845_v62 = vpop.f32.mrb[52].mxu1 }
 0x249   :  { %v846_v63 = vadd.f32 %v845_v62, %v2621_v44  ;;  %v847_v1 = vpop.f32.mrb[53].mxu1 }
 0x24a   :  { %v848_v2 = vadd.f32 %v847_v1, %v2624_v31  ;;  %v849_v3 = vpop.f32.mrb[54].mxu1  ;;  %1326 = vmatprep.mubr.bf16.mxu0 %v963_v61 }
 0x24b   :  { %v850_v4 = vadd.f32 %v849_v3, %v2621_v44  ;;  %v851_v5 = vpop.f32.mrb[55].mxu1  ;;  %1327 = vmatmul.mubr.bf16.gmra.mrb[112].mxu0 %v962_v60  ;;  %v926_v7 = vmax.f32 %v846_v63, 0.0 }
 0x24c   :  { %v852_v6 = vadd.f32 %v851_v5, %v2624_v31  ;;  %v927_v9 = vmax.f32 %v848_v2, 0.0 }
 0x24d   :  { %v928_v8 = vmax.f32 %v850_v4, 0.0 }
 0x24e   :  { %v929_v10 = vmax.f32 %v852_v6, 0.0 }
 0x24f   :  { %v964_v11 = vpack.c.bf16 %v928_v8, %v926_v7 }
 0x250   :  { %v965_v12 = vpack.c.bf16 %v929_v10, %v927_v9  ;;  %v855_v13 = vpop.f32.mrb[56].mxu1 }
 0x251   :  { %v856_v14 = vadd.f32 %v855_v13, %v2621_v44  ;;  %v857_v15 = vpop.f32.mrb[57].mxu1 }
 0x252   :  { %v858_v16 = vadd.f32 %v857_v15, %v2624_v31  ;;  %v859_v17 = vpop.f32.mrb[58].mxu1  ;;  %1336 = vmatprep.mubr.bf16.mxu0 %v965_v12 }
 0x253   :  { %v860_v18 = vadd.f32 %v859_v17, %v2621_v44  ;;  %v861_v19 = vpop.f32.mrb[59].mxu1  ;;  %1337 = vmatmul.mubr.bf16.gmra.mrb[116].mxu0 %v964_v11  ;;  %v930_v21 = vmax.f32 %v856_v14, 0.0 }
 0x254   :  { %v862_v20 = vadd.f32 %v861_v19, %v2624_v31  ;;  %v931_v23 = vmax.f32 %v858_v16, 0.0 }
 0x255   :  { %v932_v22 = vmax.f32 %v860_v18, 0.0 }
 0x256   :  { %v933_v24 = vmax.f32 %v862_v20, 0.0 }
 0x257   :  { %v966_v25 = vpack.c.bf16 %v932_v22, %v930_v21 }
 0x258   :  { %v967_v26 = vpack.c.bf16 %v933_v24, %v931_v23  ;;  %v865_v27 = vpop.f32.mrb[60].mxu1 }
 0x259   :  { %v866_v29 = vadd.f32 %v865_v27, %v2621_v44  ;;  %v867_v30 = vpop.f32.mrb[61].mxu1 }
 0x25a   :  { %v868_v33 = vadd.f32 %v867_v30, %v2624_v31  ;;  %v869_v34 = vpop.f32.mrb[62].mxu1  ;;  %1346 = vmatprep.mubr.bf16.mxu0 %v967_v26 }
 0x25b   :  { %v870_v35 = vadd.f32 %v869_v34, %v2621_v44  ;;  %v871_v36 = vpop.f32.mrb[63].mxu1  ;;  %1347 = vmatmul.mubr.bf16.gmra.mrb[120].mxu0 %v966_v25  ;;  %v934_v38 = vmax.f32 %v866_v29, 0.0  ;;  %v2697_v44 = vrot.slane %v1002_v45, %v2545_v28 }
 0x25c   :  { %v872_v37 = vadd.f32 %v871_v36, %v2624_v31  ;;  %v935_v40 = vmax.f32 %v868_v33, 0.0 }
 0x25d   :  { %v936_v39 = vmax.f32 %v870_v35, 0.0 }
 0x25e   :  { %v937_v41 = vmax.f32 %v872_v37, 0.0 }
 0x25f   :  { %v968_v42 = vpack.c.bf16 %v936_v39, %v934_v38 }
 0x260   :  { %v969_v43 = vpack.c.bf16 %v937_v41, %v935_v40 }
 0x262   :  { %1356 = vmatprep.mubr.bf16.mxu0 %v969_v43 }
 0x263   :  { %1357 = vmatmul.mubr.bf16.gmra.mrb[124].mxu0 %v968_v42 }
 0x2be   :  { %v1208_v46 = vpop.f32.mrb[64].mxu0 }
 0x2bf   :  { %v1209_v31 = vadd.f32 %v1208_v46, %v2694_v32  ;;  %v1210_v47 = vpop.f32.mrb[65].mxu0 }
 0x2c0   :  { %v1211_v48 = vadd.f32 %v1210_v47, %v2697_v44  ;;  %v1212_v49 = vpop.f32.mrb[66].mxu0 }
 0x2c1   :  { %v1213_v50 = vadd.f32 %v1212_v49, %v2694_v32  ;;  %v1214_v51 = vpop.f32.mrb[67].mxu0  ;;  %v1367_v53 = vmax.f32 %v1209_v31, 0.0 }
 0x2c2   :  { %v1215_v52 = vadd.f32 %v1214_v51, %v2697_v44  ;;  %v1368_v55 = vmax.f32 %v1211_v48, 0.0 }
 0x2c3   :  { %v1369_v54 = vmax.f32 %v1213_v50, 0.0 }
 0x2c4   :  { %v1370_v0 = vmax.f32 %v1215_v52, 0.0 }
 0x2c5   :  { %v1431_v56 = vpack.c.bf16 %v1369_v54, %v1367_v53 }
 0x2c6   :  { %v1432_v57 = vpack.c.bf16 %v1370_v0, %v1368_v55  ;;  %v1218_v28 = vpop.f32.mrb[68].mxu0 }
 0x2c7   :  { %v1219_v58 = vadd.f32 %v1218_v28, %v2694_v32  ;;  %v1220_v59 = vpop.f32.mrb[69].mxu0 }
 0x2c8   :  { %v1221_v60 = vadd.f32 %v1220_v59, %v2697_v44  ;;  %v1222_v61 = vpop.f32.mrb[70].mxu0  ;;  %1630 = vmatprep.mubr.bf16.mxu0 %v1432_v57 }
 0x2c9   :  { %v1223_v62 = vadd.f32 %v1222_v61, %v2694_v32  ;;  %v1224_v63 = vpop.f32.mrb[71].mxu0  ;;  %1631 = vmatmul.mubr.bf16.vlgmr.msra.gmra.mrb[128].mxu0 %v1431_v56  ;;  %v1371_v2 = vmax.f32 %v1219_v58, 0.0 }
 0x2ca   :  { %v1225_v1 = vadd.f32 %v1224_v63, %v2697_v44  ;;  %v1372_v4 = vmax.f32 %v1221_v60, 0.0 }
 0x2cb   :  { %v1373_v3 = vmax.f32 %v1223_v62, 0.0 }
 0x2cc   :  { %v1374_v5 = vmax.f32 %v1225_v1, 0.0 }
 0x2cd   :  { %v1433_v6 = vpack.c.bf16 %v1373_v3, %v1371_v2 }
 0x2ce   :  { %v1434_v7 = vpack.c.bf16 %v1374_v5, %v1372_v4  ;;  %v1228_v8 = vpop.f32.mrb[72].mxu0 }
 0x2cf   :  { %v1229_v9 = vadd.f32 %v1228_v8, %v2694_v32  ;;  %v1230_v10 = vpop.f32.mrb[73].mxu0 }
 0x2d0   :  { %v1231_v11 = vadd.f32 %v1230_v10, %v2697_v44  ;;  %v1232_v12 = vpop.f32.mrb[74].mxu0  ;;  %1638 = vmatprep.mubr.bf16.mxu0 %v1434_v7 }
 0x2d1   :  { %v1233_v13 = vadd.f32 %v1232_v12, %v2694_v32  ;;  %v1234_v14 = vpop.f32.mrb[75].mxu0  ;;  %1639 = vmatmul.mubr.bf16.gmra.mrb[132].mxu0 %v1433_v6  ;;  %v1375_v16 = vmax.f32 %v1229_v9, 0.0 }
 0x2d2   :  { %v1235_v15 = vadd.f32 %v1234_v14, %v2697_v44  ;;  %v1376_v18 = vmax.f32 %v1231_v11, 0.0 }
 0x2d3   :  { %v1377_v17 = vmax.f32 %v1233_v13, 0.0 }
 0x2d4   :  { %v1378_v19 = vmax.f32 %v1235_v15, 0.0 }
 0x2d5   :  { %v1435_v20 = vpack.c.bf16 %v1377_v17, %v1375_v16 }
 0x2d6   :  { %v1436_v21 = vpack.c.bf16 %v1378_v19, %v1376_v18  ;;  %v1238_v22 = vpop.f32.mrb[76].mxu0 }
 0x2d7   :  { %v1239_v23 = vadd.f32 %v1238_v22, %v2694_v32  ;;  %v1240_v24 = vpop.f32.mrb[77].mxu0 }
 0x2d8   :  { %v1241_v25 = vadd.f32 %v1240_v24, %v2697_v44  ;;  %v1242_v26 = vpop.f32.mrb[78].mxu0  ;;  %1646 = vmatprep.mubr.bf16.mxu0 %v1436_v21 }
 0x2d9   :  { %v1243_v27 = vadd.f32 %v1242_v26, %v2694_v32  ;;  %v1244_v29 = vpop.f32.mrb[79].mxu0  ;;  %1647 = vmatmul.mubr.bf16.gmra.mrb[136].mxu0 %v1435_v20  ;;  %v1379_v33 = vmax.f32 %v1239_v23, 0.0 }
 0x2da   :  { %v1245_v30 = vadd.f32 %v1244_v29, %v2697_v44  ;;  %v1380_v35 = vmax.f32 %v1241_v25, 0.0 }
 0x2db   :  { %v1381_v34 = vmax.f32 %v1243_v27, 0.0 }
 0x2dc   :  { %v1382_v36 = vmax.f32 %v1245_v30, 0.0 }
 0x2dd   :  { %v1437_v37 = vpack.c.bf16 %v1381_v34, %v1379_v33 }
 0x2de   :  { %v1438_v38 = vpack.c.bf16 %v1382_v36, %v1380_v35  ;;  %v1248_v39 = vpop.f32.mrb[80].mxu0 }
 0x2df   :  { %v1249_v40 = vadd.f32 %v1248_v39, %v2694_v32  ;;  %v1250_v41 = vpop.f32.mrb[81].mxu0 }
 0x2e0   :  { %v1251_v42 = vadd.f32 %v1250_v41, %v2697_v44  ;;  %v1252_v43 = vpop.f32.mrb[82].mxu0  ;;  %1654 = vmatprep.mubr.bf16.mxu1 %v1438_v38 }
 0x2e1   :  { %v1253_v45 = vadd.f32 %v1252_v43, %v2694_v32  ;;  %v1254_v46 = vpop.f32.mrb[83].mxu0  ;;  %1655 = vmatmul.mubr.bf16.vlgmr.msra.gmra.mrb[64].mxu1 %v1437_v37  ;;  %v1383_v47 = vmax.f32 %v1249_v40, 0.0 }
 0x2e2   :  { %v1255_v31 = vadd.f32 %v1254_v46, %v2697_v44  ;;  %v1384_v49 = vmax.f32 %v1251_v42, 0.0 }
 0x2e3   :  { %v1385_v48 = vmax.f32 %v1253_v45, 0.0 }
 0x2e4   :  { %v1386_v50 = vmax.f32 %v1255_v31, 0.0 }
 0x2e5   :  { %v1439_v51 = vpack.c.bf16 %v1385_v48, %v1383_v47 }
 0x2e6   :  { %v1440_v52 = vpack.c.bf16 %v1386_v50, %v1384_v49  ;;  %v1258_v53 = vpop.f32.mrb[84].mxu0 }
 0x2e7   :  { %v1259_v54 = vadd.f32 %v1258_v53, %v2694_v32  ;;  %v1260_v55 = vpop.f32.mrb[85].mxu0 }
 0x2e8   :  { %v1261_v0 = vadd.f32 %v1260_v55, %v2697_v44  ;;  %v1262_v56 = vpop.f32.mrb[86].mxu0  ;;  %1662 = vmatprep.mubr.bf16.mxu1 %v1440_v52 }
 0x2e9   :  { %v1263_v57 = vadd.f32 %v1262_v56, %v2694_v32  ;;  %v1264_v28 = vpop.f32.mrb[87].mxu0  ;;  %1663 = vmatmul.mubr.bf16.gmra.mrb[68].mxu1 %v1439_v51  ;;  %v1387_v59 = vmax.f32 %v1259_v54, 0.0 }
 0x2ea   :  { %v1265_v58 = vadd.f32 %v1264_v28, %v2697_v44  ;;  %v1388_v61 = vmax.f32 %v1261_v0, 0.0 }
 0x2eb   :  { %v1389_v60 = vmax.f32 %v1263_v57, 0.0 }
 0x2ec   :  { %v1390_v62 = vmax.f32 %v1265_v58, 0.0 }
 0x2ed   :  { %v1441_v63 = vpack.c.bf16 %v1389_v60, %v1387_v59 }
 0x2ee   :  { %v1442_v1 = vpack.c.bf16 %v1390_v62, %v1388_v61  ;;  %v1268_v2 = vpop.f32.mrb[88].mxu0 }
 0x2ef   :  { %v1269_v3 = vadd.f32 %v1268_v2, %v2694_v32  ;;  %v1270_v4 = vpop.f32.mrb[89].mxu0 }
 0x2f0   :  { %v1271_v5 = vadd.f32 %v1270_v4, %v2697_v44  ;;  %v1272_v6 = vpop.f32.mrb[90].mxu0  ;;  %1670 = vmatprep.mubr.bf16.mxu1 %v1442_v1 }
 0x2f1   :  { %v1273_v7 = vadd.f32 %v1272_v6, %v2694_v32  ;;  %v1274_v8 = vpop.f32.mrb[91].mxu0  ;;  %1671 = vmatmul.mubr.bf16.gmra.mrb[72].mxu1 %v1441_v63  ;;  %v1391_v10 = vmax.f32 %v1269_v3, 0.0 }
 0x2f2   :  { %v1275_v9 = vadd.f32 %v1274_v8, %v2697_v44  ;;  %v1392_v12 = vmax.f32 %v1271_v5, 0.0 }
 0x2f3   :  { %v1393_v11 = vmax.f32 %v1273_v7, 0.0 }
 0x2f4   :  { %v1394_v13 = vmax.f32 %v1275_v9, 0.0 }
 0x2f5   :  { %v1443_v14 = vpack.c.bf16 %v1393_v11, %v1391_v10 }
 0x2f6   :  { %v1444_v15 = vpack.c.bf16 %v1394_v13, %v1392_v12  ;;  %v1278_v16 = vpop.f32.mrb[92].mxu0 }
 0x2f7   :  { %v1279_v17 = vadd.f32 %v1278_v16, %v2694_v32  ;;  %v1280_v18 = vpop.f32.mrb[93].mxu0 }
 0x2f8   :  { %v1281_v19 = vadd.f32 %v1280_v18, %v2697_v44  ;;  %v1282_v20 = vpop.f32.mrb[94].mxu0  ;;  %1678 = vmatprep.mubr.bf16.mxu1 %v1444_v15 }
 0x2f9   :  { %v1283_v21 = vadd.f32 %v1282_v20, %v2694_v32  ;;  %v1284_v22 = vpop.f32.mrb[95].mxu0  ;;  %1679 = vmatmul.mubr.bf16.gmra.mrb[76].mxu1 %v1443_v14  ;;  %v1395_v24 = vmax.f32 %v1279_v17, 0.0 }
 0x2fa   :  { %v1285_v23 = vadd.f32 %v1284_v22, %v2697_v44  ;;  %v1396_v26 = vmax.f32 %v1281_v19, 0.0 }
 0x2fb   :  { %v1397_v25 = vmax.f32 %v1283_v21, 0.0 }
 0x2fc   :  { %v1398_v27 = vmax.f32 %v1285_v23, 0.0 }
 0x2fd   :  { %v1445_v29 = vpack.c.bf16 %v1397_v25, %v1395_v24 }
 0x2fe   :  { %v1446_v30 = vpack.c.bf16 %v1398_v27, %v1396_v26  ;;  %v1288_v33 = vpop.f32.mrb[96].mxu0 }
 0x2ff   :  { %v1289_v34 = vadd.f32 %v1288_v33, %v2694_v32  ;;  %v1290_v35 = vpop.f32.mrb[97].mxu0 }
 0x300   :  { %v1291_v36 = vadd.f32 %v1290_v35, %v2697_v44  ;;  %v1292_v37 = vpop.f32.mrb[98].mxu0  ;;  %1686 = vmatprep.mubr.bf16.mxu1 %v1446_v30 }
 0x301   :  { %v1293_v38 = vadd.f32 %v1292_v37, %v2694_v32  ;;  %v1294_v39 = vpop.f32.mrb[99].mxu0  ;;  %1687 = vmatmul.mubr.bf16.gmra.mrb[80].mxu1 %v1445_v29  ;;  %v1399_v41 = vmax.f32 %v1289_v34, 0.0 }
 0x302   :  { %v1295_v40 = vadd.f32 %v1294_v39, %v2697_v44  ;;  %v1400_v43 = vmax.f32 %v1291_v36, 0.0 }
 0x303   :  { %v1401_v42 = vmax.f32 %v1293_v38, 0.0 }
 0x304   :  { %v1402_v45 = vmax.f32 %v1295_v40, 0.0 }
 0x305   :  { %v1447_v46 = vpack.c.bf16 %v1401_v42, %v1399_v41 }
 0x306   :  { %v1448_v31 = vpack.c.bf16 %v1402_v45, %v1400_v43  ;;  %v1298_v47 = vpop.f32.mrb[100].mxu0 }
 0x307   :  { %v1299_v48 = vadd.f32 %v1298_v47, %v2694_v32  ;;  %v1300_v49 = vpop.f32.mrb[101].mxu0 }
 0x308   :  { %v1301_v50 = vadd.f32 %v1300_v49, %v2697_v44  ;;  %v1302_v51 = vpop.f32.mrb[102].mxu0  ;;  %1694 = vmatprep.mubr.bf16.mxu1 %v1448_v31 }
 0x309   :  { %v1303_v52 = vadd.f32 %v1302_v51, %v2694_v32  ;;  %v1304_v53 = vpop.f32.mrb[103].mxu0  ;;  %1695 = vmatmul.mubr.bf16.gmra.mrb[84].mxu1 %v1447_v46  ;;  %v1403_v55 = vmax.f32 %v1299_v48, 0.0 }
 0x30a   :  { %v1305_v54 = vadd.f32 %v1304_v53, %v2697_v44  ;;  %v1404_v56 = vmax.f32 %v1301_v50, 0.0 }
 0x30b   :  { %v1405_v0 = vmax.f32 %v1303_v52, 0.0 }
 0x30c   :  { %v1406_v57 = vmax.f32 %v1305_v54, 0.0 }
 0x30d   :  { %v1449_v28 = vpack.c.bf16 %v1405_v0, %v1403_v55 }
 0x30e   :  { %v1450_v58 = vpack.c.bf16 %v1406_v57, %v1404_v56  ;;  %v1308_v59 = vpop.f32.mrb[104].mxu0 }
 0x30f   :  { %v1309_v60 = vadd.f32 %v1308_v59, %v2694_v32  ;;  %v1310_v61 = vpop.f32.mrb[105].mxu0 }
 0x310   :  { %v1311_v62 = vadd.f32 %v1310_v61, %v2697_v44  ;;  %v1312_v63 = vpop.f32.mrb[106].mxu0  ;;  %1702 = vmatprep.mubr.bf16.mxu1 %v1450_v58 }
 0x311   :  { %v1313_v1 = vadd.f32 %v1312_v63, %v2694_v32  ;;  %v1314_v2 = vpop.f32.mrb[107].mxu0  ;;  %1703 = vmatmul.mubr.bf16.gmra.mrb[88].mxu1 %v1449_v28  ;;  %v1407_v4 = vmax.f32 %v1309_v60, 0.0 }
 0x312   :  { %v1315_v3 = vadd.f32 %v1314_v2, %v2697_v44  ;;  %v1408_v6 = vmax.f32 %v1311_v62, 0.0 }
 0x313   :  { %v1409_v5 = vmax.f32 %v1313_v1, 0.0 }
 0x314   :  { %v1410_v7 = vmax.f32 %v1315_v3, 0.0 }
 0x315   :  { %v1451_v8 = vpack.c.bf16 %v1409_v5, %v1407_v4 }
 0x316   :  { %v1452_v9 = vpack.c.bf16 %v1410_v7, %v1408_v6  ;;  %v1318_v10 = vpop.f32.mrb[108].mxu0 }
 0x317   :  { %v1319_v11 = vadd.f32 %v1318_v10, %v2694_v32  ;;  %v1320_v12 = vpop.f32.mrb[109].mxu0 }
 0x318   :  { %v1321_v13 = vadd.f32 %v1320_v12, %v2697_v44  ;;  %v1322_v14 = vpop.f32.mrb[110].mxu0  ;;  %1710 = vmatprep.mubr.bf16.mxu1 %v1452_v9 }
 0x319   :  { %v1323_v15 = vadd.f32 %v1322_v14, %v2694_v32  ;;  %v1324_v16 = vpop.f32.mrb[111].mxu0  ;;  %1711 = vmatmul.mubr.bf16.gmra.mrb[92].mxu1 %v1451_v8  ;;  %v1411_v18 = vmax.f32 %v1319_v11, 0.0 }
 0x31a   :  { %v1325_v17 = vadd.f32 %v1324_v16, %v2697_v44  ;;  %v1412_v20 = vmax.f32 %v1321_v13, 0.0 }
 0x31b   :  { %v1413_v19 = vmax.f32 %v1323_v15, 0.0 }
 0x31c   :  { %v1414_v21 = vmax.f32 %v1325_v17, 0.0 }
 0x31d   :  { %v1453_v22 = vpack.c.bf16 %v1413_v19, %v1411_v18  ;;  %v2766_v19 = vld [vmem:[%s2823_s8] ss:$0 sm:$0xff]  ;;  %s2235_s8 = smov [#allocation7]  }
 0x31e   :  { %v1454_v23 = vpack.c.bf16 %v1414_v21, %v1412_v20  ;;  %v1328_v24 = vpop.f32.mrb[112].mxu0  ;;  %s1796_s16 = sshll.u32 %s2235_s8, 4  ;;  %s1797_s16 = int_to_ptr.vmem [resolvable:$true] %s1796_s16 }
 0x31f   :  { %v1329_v25 = vadd.f32 %v1328_v24, %v2694_v32  ;;  %v1330_v26 = vpop.f32.mrb[113].mxu0  ;;  %s2200_s17 = scalar_lea.vmem %s1797_s16, 4096  ;;  %p2205_p3 = scmp.lt.s32.totalorder %s1797_s16, %s1797_s16 }
 0x320   :  { %v1331_v27 = vadd.f32 %v1330_v26, %v2697_v44  ;;  %v1332_v29 = vpop.f32.mrb[114].mxu0  ;;  %1718 = vmatprep.mubr.bf16.mxu1 %v1454_v23  ;;  %p2201_p2 = scmp.ne.s32.totalorder %s1797_s16, %s2200_s17  ;;  %p2206_p4 = scmp.lt.s32.totalorder %s2200_s17, %s2200_s17 }
 0x321   :  { %v1333_v30 = vadd.f32 %v1332_v29, %v2694_v32  ;;  %v1334_v33 = vpop.f32.mrb[115].mxu0  ;;  %1719 = vmatmul.mubr.bf16.gmra.mrb[96].mxu1 %v1453_v22  ;;  %v1415_v35 = vmax.f32 %v1329_v25, 0.0 }
 0x322   :  { %v1335_v34 = vadd.f32 %v1334_v33, %v2697_v44  ;;  %v1416_v37 = vmax.f32 %v1331_v27, 0.0  ;;  %p2207_p5 = por %p2206_p4, %p2205_p3 }
 0x323   :  { %v1417_v36 = vmax.f32 %v1333_v30, 0.0 }
 0x324   :  { %v1418_v38 = vmax.f32 %v1335_v34, 0.0  ;;  %p2208_p6 = pnand %p2207_p5, %p2201_p2 }
 0x325   :  { %v1455_v39 = vpack.c.bf16 %v1417_v36, %v1415_v35 }
 0x326   :  { %v1456_v40 = vpack.c.bf16 %v1418_v38, %v1416_v37  ;;  %v1338_v41 = vpop.f32.mrb[116].mxu0 }
 0x327   :  { %v1339_v42 = vadd.f32 %v1338_v41, %v2694_v32  ;;  %v1340_v43 = vpop.f32.mrb[117].mxu0 }
 0x328   :  { %v1341_v45 = vadd.f32 %v1340_v43, %v2697_v44  ;;  %v1342_v46 = vpop.f32.mrb[118].mxu0  ;;  %1726 = vmatprep.mubr.bf16.mxu1 %v1456_v40 }
 0x329   :  { %v1343_v31 = vadd.f32 %v1342_v46, %v2694_v32  ;;  %v1344_v47 = vpop.f32.mrb[119].mxu0  ;;  %1727 = vmatmul.mubr.bf16.gmra.mrb[100].mxu1 %v1455_v39  ;;  %v1419_v49 = vmax.f32 %v1339_v42, 0.0 }
 0x32a   :  { %v1345_v48 = vadd.f32 %v1344_v47, %v2697_v44  ;;  %v1420_v51 = vmax.f32 %v1341_v45, 0.0 }
 0x32b   :  { %v1421_v50 = vmax.f32 %v1343_v31, 0.0 }
 0x32c   :  { %v1422_v52 = vmax.f32 %v1345_v48, 0.0 }
 0x32d   :  { %v1457_v53 = vpack.c.bf16 %v1421_v50, %v1419_v49 }
 0x32e   :  { %v1458_v54 = vpack.c.bf16 %v1422_v52, %v1420_v51  ;;  %v1348_v55 = vpop.f32.mrb[120].mxu0 }
 0x32f   :  { %v1349_v0 = vadd.f32 %v1348_v55, %v2694_v32  ;;  %v1350_v56 = vpop.f32.mrb[121].mxu0 }
 0x330   :  { %v1351_v57 = vadd.f32 %v1350_v56, %v2697_v44  ;;  %v1352_v28 = vpop.f32.mrb[122].mxu0  ;;  %1734 = vmatprep.mubr.bf16.mxu1 %v1458_v54 }
 0x331   :  { %v1353_v58 = vadd.f32 %v1352_v28, %v2694_v32  ;;  %v1354_v59 = vpop.f32.mrb[123].mxu0  ;;  %1735 = vmatmul.mubr.bf16.gmra.mrb[104].mxu1 %v1457_v53  ;;  %v1423_v61 = vmax.f32 %v1349_v0, 0.0 }
 0x332   :  { %v1355_v60 = vadd.f32 %v1354_v59, %v2697_v44  ;;  %v1424_v63 = vmax.f32 %v1351_v57, 0.0 }
 0x333   :  { %v1425_v62 = vmax.f32 %v1353_v58, 0.0 }
 0x334   :  { %v1426_v1 = vmax.f32 %v1355_v60, 0.0 }
 0x335   :  { %v1459_v2 = vpack.c.bf16 %v1425_v62, %v1423_v61 }
 0x336   :  { %v1460_v3 = vpack.c.bf16 %v1426_v1, %v1424_v63  ;;  %v1358_v4 = vpop.f32.mrb[124].mxu0 }
 0x337   :  { %v1359_v5 = vadd.f32 %v1358_v4, %v2694_v32  ;;  %v1360_v6 = vpop.f32.mrb[125].mxu0 }
 0x338   :  { %v1361_v7 = vadd.f32 %v1360_v6, %v2697_v44  ;;  %v1362_v8 = vpop.f32.mrb[126].mxu0  ;;  %1742 = vmatprep.mubr.bf16.mxu1 %v1460_v3 }
 0x339   :  { %v1363_v9 = vadd.f32 %v1362_v8, %v2694_v32  ;;  %v1364_v10 = vpop.f32.mrb[127].mxu0  ;;  %1743 = vmatmul.mubr.bf16.gmra.mrb[108].mxu1 %v1459_v2  ;;  %v1427_v12 = vmax.f32 %v1359_v5, 0.0 }
 0x33a   :  { %v1365_v11 = vadd.f32 %v1364_v10, %v2697_v44  ;;  %v1428_v14 = vmax.f32 %v1361_v7, 0.0 }
 0x33b   :  { %v1429_v13 = vmax.f32 %v1363_v9, 0.0 }
 0x33c   :  { %v1430_v15 = vmax.f32 %v1365_v11, 0.0 }
 0x33d   :  { %v1461_v16 = vpack.c.bf16 %v1429_v13, %v1427_v12 }
 0x33e   :  { %v1462_v17 = vpack.c.bf16 %v1430_v15, %v1428_v14 }
 0x340   :  { %1750 = vmatprep.mubr.bf16.mxu1 %v1462_v17 }
 0x341   :  { %1751 = vmatmul.mubr.bf16.gmra.mrb[112].mxu1 %v1461_v16 }
 0x39c   :  { %v1924_v18 = vpop.f32.mrb[128].mxu0 }
 0x39d   :  { %v1925_v20 = vpop.f32.mrb[129].mxu0 }
 0x39e   :  { %v1926_v32 = vadd.f32 %v1925_v20, %v1924_v18  ;;  %v1927_v21 = vpop.f32.mrb[130].mxu0 }
 0x39f   :  { %v1928_v22 = vpop.f32.mrb[131].mxu0 }
 0x3a0   :  { %v1633_v44 = vadd.f32 %v1926_v32, %v2766_v19  ;;  %v1929_v23 = vadd.f32 %v1928_v22, %v1927_v21 }
 0x3a2   :  { %1759 = vst [vmem:[#allocation7] sm:$0xff] %v1633_v44  ;;  %v1636_v24 = vadd.f32 %v1929_v23, %v2766_v19 }
 0x3a4   :  { %1760 = vst [vmem:[#allocation7 + $0x8] sm:$0xff] %v1636_v24  ;;  %v1930_v25 = vpop.f32.mrb[132].mxu0 }
 0x3a5   :  { %v1931_v26 = vpop.f32.mrb[133].mxu0 }
 0x3a6   :  { %v1932_v27 = vadd.f32 %v1931_v26, %v1930_v25  ;;  %v1933_v29 = vpop.f32.mrb[134].mxu0 }
 0x3a7   :  { %v1934_v30 = vpop.f32.mrb[135].mxu0 }
 0x3a8   :  { %v1641_v33 = vadd.f32 %v1932_v27, %v2766_v19  ;;  %v1935_v34 = vadd.f32 %v1934_v30, %v1933_v29 }
 0x3aa   :  { %1761 = vst [vmem:[#allocation7 + $0x10] sm:$0xff] %v1641_v33  ;;  %v1644_v35 = vadd.f32 %v1935_v34, %v2766_v19 }
 0x3ac   :  { %1762 = vst [vmem:[#allocation7 + $0x18] sm:$0xff] %v1644_v35  ;;  %v1936_v36 = vpop.f32.mrb[136].mxu0 }
 0x3ad   :  { %v1937_v37 = vpop.f32.mrb[137].mxu0 }
 0x3ae   :  { %v1938_v38 = vadd.f32 %v1937_v37, %v1936_v36  ;;  %v1939_v39 = vpop.f32.mrb[138].mxu0 }
 0x3af   :  { %v1940_v40 = vpop.f32.mrb[139].mxu0 }
 0x3b0   :  { %v1649_v41 = vadd.f32 %v1938_v38, %v2766_v19  ;;  %v1941_v42 = vadd.f32 %v1940_v40, %v1939_v39 }
 0x3b2   :  { %1763 = vst [vmem:[#allocation7 + $0x20] sm:$0xff] %v1649_v41  ;;  %v1652_v43 = vadd.f32 %v1941_v42, %v2766_v19 }
 0x3b4   :  { %1764 = vst [vmem:[#allocation7 + $0x28] sm:$0xff] %v1652_v43  ;;  %v1942_v45 = vpop.f32.mrb[64].mxu1 }
 0x3b5   :  { %v1943_v46 = vpop.f32.mrb[65].mxu1 }
 0x3b6   :  { %v1944_v31 = vadd.f32 %v1943_v46, %v1942_v45  ;;  %v1945_v47 = vpop.f32.mrb[66].mxu1 }
 0x3b7   :  { %v1946_v48 = vpop.f32.mrb[67].mxu1 }
 0x3b8   :  { %v1657_v49 = vadd.f32 %v1944_v31, %v2766_v19  ;;  %v1947_v50 = vadd.f32 %v1946_v48, %v1945_v47 }
 0x3ba   :  { %1765 = vst [vmem:[#allocation7 + $0x30] sm:$0xff] %v1657_v49  ;;  %v1660_v51 = vadd.f32 %v1947_v50, %v2766_v19 }
 0x3bc   :  { %1766 = vst [vmem:[#allocation7 + $0x38] sm:$0xff] %v1660_v51  ;;  %v1948_v52 = vpop.f32.mrb[68].mxu1 }
 0x3bd   :  { %v1949_v53 = vpop.f32.mrb[69].mxu1 }
 0x3be   :  { %v1950_v54 = vadd.f32 %v1949_v53, %v1948_v52  ;;  %v1951_v55 = vpop.f32.mrb[70].mxu1 }
 0x3bf   :  { %v1952_v0 = vpop.f32.mrb[71].mxu1 }
 0x3c0   :  { %v1665_v56 = vadd.f32 %v1950_v54, %v2766_v19  ;;  %v1953_v57 = vadd.f32 %v1952_v0, %v1951_v55 }
 0x3c2   :  { %1767 = vst [vmem:[#allocation7 + $0x40] sm:$0xff] %v1665_v56  ;;  %v1668_v28 = vadd.f32 %v1953_v57, %v2766_v19 }
 0x3c4   :  { %1768 = vst [vmem:[#allocation7 + $0x48] sm:$0xff] %v1668_v28  ;;  %v1954_v58 = vpop.f32.mrb[72].mxu1 }
 0x3c5   :  { %v1955_v59 = vpop.f32.mrb[73].mxu1 }
 0x3c6   :  { %v1956_v60 = vadd.f32 %v1955_v59, %v1954_v58  ;;  %v1957_v61 = vpop.f32.mrb[74].mxu1 }
 0x3c7   :  { %v1958_v62 = vpop.f32.mrb[75].mxu1 }
 0x3c8   :  { %v1673_v63 = vadd.f32 %v1956_v60, %v2766_v19  ;;  %v1959_v1 = vadd.f32 %v1958_v62, %v1957_v61 }
 0x3ca   :  { %1769 = vst [vmem:[#allocation7 + $0x50] sm:$0xff] %v1673_v63  ;;  %v1676_v2 = vadd.f32 %v1959_v1, %v2766_v19 }
 0x3cc   :  { %1770 = vst [vmem:[#allocation7 + $0x58] sm:$0xff] %v1676_v2  ;;  %v1960_v3 = vpop.f32.mrb[76].mxu1 }
 0x3cd   :  { %v1961_v4 = vpop.f32.mrb[77].mxu1 }
 0x3ce   :  { %v1962_v5 = vadd.f32 %v1961_v4, %v1960_v3  ;;  %v1963_v6 = vpop.f32.mrb[78].mxu1 }
 0x3cf   :  { %v1964_v7 = vpop.f32.mrb[79].mxu1 }
 0x3d0   :  { %v1681_v8 = vadd.f32 %v1962_v5, %v2766_v19  ;;  %v1965_v9 = vadd.f32 %v1964_v7, %v1963_v6 }
 0x3d2   :  { %1771 = vst [vmem:[#allocation7 + $0x60] sm:$0xff] %v1681_v8  ;;  %v1684_v10 = vadd.f32 %v1965_v9, %v2766_v19 }
 0x3d4   :  { %1772 = vst [vmem:[#allocation7 + $0x68] sm:$0xff] %v1684_v10  ;;  %v1966_v11 = vpop.f32.mrb[80].mxu1 }
 0x3d5   :  { %v1967_v12 = vpop.f32.mrb[81].mxu1 }
 0x3d6   :  { %v1968_v13 = vadd.f32 %v1967_v12, %v1966_v11  ;;  %v1969_v14 = vpop.f32.mrb[82].mxu1 }
 0x3d7   :  { %v1970_v15 = vpop.f32.mrb[83].mxu1 }
 0x3d8   :  { %v1689_v16 = vadd.f32 %v1968_v13, %v2766_v19  ;;  %v1971_v17 = vadd.f32 %v1970_v15, %v1969_v14 }
 0x3da   :  { %1773 = vst [vmem:[#allocation7 + $0x70] sm:$0xff] %v1689_v16  ;;  %v1692_v18 = vadd.f32 %v1971_v17, %v2766_v19 }
 0x3dc   :  { %1774 = vst [vmem:[#allocation7 + $0x78] sm:$0xff] %v1692_v18  ;;  %v1972_v20 = vpop.f32.mrb[84].mxu1 }
 0x3dd   :  { %v1973_v32 = vpop.f32.mrb[85].mxu1 }
 0x3de   :  { %v1974_v21 = vadd.f32 %v1973_v32, %v1972_v20  ;;  %v1975_v22 = vpop.f32.mrb[86].mxu1 }
 0x3df   :  { %v1976_v44 = vpop.f32.mrb[87].mxu1 }
 0x3e0   :  { %v1697_v23 = vadd.f32 %v1974_v21, %v2766_v19  ;;  %v1977_v24 = vadd.f32 %v1976_v44, %v1975_v22 }
 0x3e2   :  { %1775 = vst [vmem:[#allocation7 + $0x80] sm:$0xff] %v1697_v23  ;;  %v1700_v25 = vadd.f32 %v1977_v24, %v2766_v19 }
 0x3e4   :  { %1776 = vst [vmem:[#allocation7 + $0x88] sm:$0xff] %v1700_v25  ;;  %v1978_v26 = vpop.f32.mrb[88].mxu1 }
 0x3e5   :  { %v1979_v27 = vpop.f32.mrb[89].mxu1 }
 0x3e6   :  { %v1980_v29 = vadd.f32 %v1979_v27, %v1978_v26  ;;  %v1981_v30 = vpop.f32.mrb[90].mxu1 }
 0x3e7   :  { %v1982_v33 = vpop.f32.mrb[91].mxu1 }
 0x3e8   :  { %v1705_v34 = vadd.f32 %v1980_v29, %v2766_v19  ;;  %v1983_v35 = vadd.f32 %v1982_v33, %v1981_v30 }
 0x3ea   :  { %1777 = vst [vmem:[#allocation7 + $0x90] sm:$0xff] %v1705_v34  ;;  %v1708_v36 = vadd.f32 %v1983_v35, %v2766_v19 }
 0x3ec   :  { %1778 = vst [vmem:[#allocation7 + $0x98] sm:$0xff] %v1708_v36  ;;  %v1984_v37 = vpop.f32.mrb[92].mxu1 }
 0x3ed   :  { %v1985_v38 = vpop.f32.mrb[93].mxu1 }
 0x3ee   :  { %v1986_v39 = vadd.f32 %v1985_v38, %v1984_v37  ;;  %v1987_v40 = vpop.f32.mrb[94].mxu1 }
 0x3ef   :  { %v1988_v41 = vpop.f32.mrb[95].mxu1 }
 0x3f0   :  { %v1713_v42 = vadd.f32 %v1986_v39, %v2766_v19  ;;  %v1989_v43 = vadd.f32 %v1988_v41, %v1987_v40 }
 0x3f2   :  { %1779 = vst [vmem:[#allocation7 + $0xa0] sm:$0xff] %v1713_v42  ;;  %v1716_v45 = vadd.f32 %v1989_v43, %v2766_v19 }
 0x3f4   :  { %1780 = vst [vmem:[#allocation7 + $0xa8] sm:$0xff] %v1716_v45  ;;  %v1990_v46 = vpop.f32.mrb[96].mxu1 }
 0x3f5   :  { %v1991_v31 = vpop.f32.mrb[97].mxu1 }
 0x3f6   :  { %v1992_v47 = vadd.f32 %v1991_v31, %v1990_v46  ;;  %v1993_v48 = vpop.f32.mrb[98].mxu1 }
 0x3f7   :  { %v1994_v49 = vpop.f32.mrb[99].mxu1 }
 0x3f8   :  { %v1721_v50 = vadd.f32 %v1992_v47, %v2766_v19  ;;  %v1995_v51 = vadd.f32 %v1994_v49, %v1993_v48 }
 0x3fa   :  { %1781 = vst [vmem:[#allocation7 + $0xb0] sm:$0xff] %v1721_v50  ;;  %v1724_v52 = vadd.f32 %v1995_v51, %v2766_v19 }
 0x3fc   :  { %1782 = vst [vmem:[#allocation7 + $0xb8] sm:$0xff] %v1724_v52  ;;  %v1996_v53 = vpop.f32.mrb[100].mxu1 }
 0x3fd   :  { %v1997_v54 = vpop.f32.mrb[101].mxu1 }
 0x3fe   :  { %v1998_v55 = vadd.f32 %v1997_v54, %v1996_v53  ;;  %v1999_v0 = vpop.f32.mrb[102].mxu1 }
 0x3ff   :  { %v2000_v56 = vpop.f32.mrb[103].mxu1 }
 0x400   :  { %v1729_v57 = vadd.f32 %v1998_v55, %v2766_v19  ;;  %v2001_v28 = vadd.f32 %v2000_v56, %v1999_v0 }
 0x402   :  { %1783 = vst [vmem:[#allocation7 + $0xc0] sm:$0xff] %v1729_v57  ;;  %v1732_v58 = vadd.f32 %v2001_v28, %v2766_v19 }
 0x404   :  { %1784 = vst [vmem:[#allocation7 + $0xc8] sm:$0xff] %v1732_v58  ;;  %v2002_v59 = vpop.f32.mrb[104].mxu1 }
 0x405   :  { %v2003_v60 = vpop.f32.mrb[105].mxu1 }
 0x406   :  { %v2004_v61 = vadd.f32 %v2003_v60, %v2002_v59  ;;  %v2005_v62 = vpop.f32.mrb[106].mxu1 }
 0x407   :  { %v2006_v63 = vpop.f32.mrb[107].mxu1 }
 0x408   :  { %v1737_v1 = vadd.f32 %v2004_v61, %v2766_v19  ;;  %v2007_v2 = vadd.f32 %v2006_v63, %v2005_v62 }
 0x40a   :  { %1785 = vst [vmem:[#allocation7 + $0xd0] sm:$0xff] %v1737_v1  ;;  %v1740_v3 = vadd.f32 %v2007_v2, %v2766_v19 }
 0x40c   :  { %1786 = vst [vmem:[#allocation7 + $0xd8] sm:$0xff] %v1740_v3  ;;  %v2008_v4 = vpop.f32.mrb[108].mxu1 }
 0x40d   :  { %v2009_v5 = vpop.f32.mrb[109].mxu1 }
 0x40e   :  { %v2010_v6 = vadd.f32 %v2009_v5, %v2008_v4  ;;  %v2011_v7 = vpop.f32.mrb[110].mxu1 }
 0x40f   :  { %v2012_v8 = vpop.f32.mrb[111].mxu1 }
 0x410   :  { %v1745_v9 = vadd.f32 %v2010_v6, %v2766_v19  ;;  %v2013_v10 = vadd.f32 %v2012_v8, %v2011_v7 }
 0x412   :  { %1787 = vst [vmem:[#allocation7 + $0xe0] sm:$0xff] %v1745_v9  ;;  %v1748_v11 = vadd.f32 %v2013_v10, %v2766_v19 }
 0x414   :  { %1788 = vst [vmem:[#allocation7 + $0xe8] sm:$0xff] %v1748_v11  ;;  %v2014_v12 = vpop.f32.mrb[112].mxu1 }
 0x415   :  { %v2015_v13 = vpop.f32.mrb[113].mxu1 }
 0x416   :  { %v2016_v14 = vadd.f32 %v2015_v13, %v2014_v12  ;;  %v2017_v15 = vpop.f32.mrb[114].mxu1 }
 0x417   :  { %v2018_v16 = vpop.f32.mrb[115].mxu1 }
 0x418   :  { %v1753_v17 = vadd.f32 %v2016_v14, %v2766_v19  ;;  %v2019_v18 = vadd.f32 %v2018_v16, %v2017_v15 }
 0x41a   :  { %1789 = vst [vmem:[#allocation7 + $0xf0] sm:$0xff] %v1753_v17  ;;  %v1756_v20 = vadd.f32 %v2019_v18, %v2766_v19 }
 0x41c   :  { %1790 = vst [vmem:[#allocation7 + $0xf8] sm:$0xff] %v1756_v20 }
 0x41d   :  { %2211 = shalt.err (!%p2208_p6)
}
 0x41e   :  { %s2212_s22 = scalar_lea.hbm %s2824_s9, 4096 }
 0x41f   :  { %p2213_p7 = scmp.ne.s32.totalorder %s2824_s9, %s2212_s22  ;;  %p2216_p8 = scmp.lt.u32.totalorder %s2212_s22, %s2824_s9 }
 0x421   :  { %p2218_p9 = pnand %p2216_p8, %p2213_p7 }
 0x423   :  { %2221 = shalt.err (!%p2218_p9)
}
 0x424   :  { %1802 = dma.vmem_to_hbm [thread:$0]  %s1797_s16, 4096, %s2824_s9, [#allocation4], %s2229_s19, %s2229_s19, %s2230_s20  }
 0x425   :  { %2226 = dma.done.wait [#allocation4], 4096  }
 0x426   :  { %2227 = vsyncadd [#allocation4], 4294963200 }
 0x427   :  { %1806 = vsyncpa [#allocation3], 1 }
 0x428   :  { %1807 = vsyncpa [#allocation6], 1 }
 0x429   :  { %1808 = vsyncpa [#allocation4], 1 }

</bundles_post_ra>
